<compile_context>
chip_gen: v7x
topology: tpu7x:2x2x1
jax: 0.10.0
libtpu: 0.0.40
codegen_flags: <defaults>
</compile_context>

<pallas_src>
import collections
import functools

import jax
import jax.numpy as jnp
from jax import lax
from jax.experimental import pallas as pl
from jax.experimental.pallas import tpu as pltpu


def _round_up(x, m):
    return ((x + m - 1) // m) * m


Dims = collections.namedtuple("Dims", "E H Hp L Lp")


# ----------------------------------------------------------------------------
# Fused bidirectional-LSTM + FC kernel.  All refs are 2-D, time-major.
#   x_ref      : (S*Bp, E)    embedded inputs, time-major, batch padded
#   w_ih_ref   : (E, 8Hp)     columns [fwd: i f o g | bwd: i f o g]
#   w_hh_ref   : (2Hp, 8Hp)   blockdiag(w_hh_f, w_hh_b), same column order
#   b_ref      : (1, 8Hp)     b_ih + b_hh folded, same column order
#   w_fc_f_ref : (Hp, Lp)     FC weights for the forward hidden half
#   w_fc_b_ref : (Hp, Lp)     FC weights for the backward hidden half
#   b_fc_ref   : (1, Lp)      FC bias (lane padded)
#   out_ref    : (S*Bp, Lp)   logits, time-major, lane padded -> unmasked vst
#   xp_f_ref   : VMEM (S*Bp, 4Hp)  hoisted forward input projections
#   xp_b_ref   : VMEM (S*Bp, 4Hp)  hoisted backward input projections
#   hf_ref     : VMEM (S*Bp, Hp)   forward hidden states
#   hb_ref     : VMEM (S*Bp, Hp)   backward hidden states (already output order)
# Gate order inside each 4Hp block: i, f, o, g (sigmoid gates first).
# ----------------------------------------------------------------------------
def bilstm_fused_kernel(x_ref, w_ih_ref, w_hh_ref, b_ref,
                        w_fc_f_ref, w_fc_b_ref, b_fc_ref,
                        out_ref,
                        xp_f_ref, xp_b_ref, hf_ref, hb_ref,
                        *, S, Bp, Hp):
    H3 = 3 * Hp
    H4 = 4 * Hp

    # ---- prologue: input projection for BOTH directions as ONE large MXU
    #      matmul, hoisted out of the serial recurrence; biases folded in.
    xp = (jnp.dot(x_ref[...], w_ih_ref[...], preferred_element_type=jnp.float32)
          + b_ref[...])                                  # (S*Bp, 8Hp)
    xp_f_ref[...] = xp[:, :H4]
    xp_b_ref[...] = xp[:, H4:]

    w_hh = w_hh_ref[...]                                 # (2Hp, 8Hp) block-diagonal

    def cell(pre, c):
        # pre columns: [i | f | o | g]; sigmoid only over 3Hp, tanh over Hp.
        sig = jax.nn.sigmoid(pre[:, :H3])
        g = jnp.tanh(pre[:, H3:])
        c_new = sig[:, Hp:2 * Hp] * c + sig[:, :Hp] * g
        h_new = sig[:, 2 * Hp:H3] * jnp.tanh(c_new)
        return h_new, c_new

    def step(t, carry):
        h_f, c_f, h_b, c_b = carry
        tb = S - 1 - t                                   # backward-direction time
        rf = pl.multiple_of(t * Bp, Bp)
        rb = pl.multiple_of(tb * Bp, Bp)
        # single fused MXU op per step for both directions
        h_cat = jnp.concatenate([h_f, h_b], axis=1)      # (Bp, 2Hp)
        g_hh = jnp.dot(h_cat, w_hh, preferred_element_type=jnp.float32)  # (Bp, 8Hp)
        h_f, c_f = cell(xp_f_ref[pl.ds(rf, Bp), :] + g_hh[:, :H4], c_f)
        h_b, c_b = cell(xp_b_ref[pl.ds(rb, Bp), :] + g_hh[:, H4:], c_b)
        hf_ref[pl.ds(rf, Bp), :] = h_f
        hb_ref[pl.ds(rb, Bp), :] = h_b                   # already in output order
        return (h_f, c_f, h_b, c_b)

    z = jnp.zeros((Bp, Hp), jnp.float32)
    lax.fori_loop(0, S, step, (z, z, z, z), unroll=min(S, 8))

    # ---- epilogue: fused FC head, split per direction (no concat copy),
    #      lane-padded output -> unmasked stores.
    out_ref[...] = (
        jnp.dot(hf_ref[...], w_fc_f_ref[...], preferred_element_type=jnp.float32)
        + jnp.dot(hb_ref[...], w_fc_b_ref[...], preferred_element_type=jnp.float32)
        + b_fc_ref[...])


# ----------------------------------------------------------------------------
# One-time weight assembly (hoisted out of the per-call path).
# ----------------------------------------------------------------------------
def prepare_params(params):
    emb = params["embedding"]
    E = emb.shape[1]
    H = params["w_hh_f"].shape[1]
    L = params["w_fc"].shape[0]
    Hp = _round_up(H, 32)          # 4*Hp is a multiple of 128
    Lp = _round_up(L, 128)

    def gate_split(w_t):
        # PyTorch column order [i | f | g | o] -> target order (i, f, o, g)
        return (w_t[..., 0:H], w_t[..., H:2 * H],
                w_t[..., 3 * H:4 * H], w_t[..., 2 * H:3 * H])

    # input->hidden, both directions stacked: (E, 8Hp)
    w_ih_all = jnp.zeros((E, 8 * Hp), jnp.float32)
    for d, key in enumerate(("w_ih_f", "w_ih_b")):
        for k, blk in enumerate(gate_split(params[key].T)):           # (E, H)
            c = (4 * d + k) * Hp
            w_ih_all = w_ih_all.at[:, c:c + H].set(blk)

    # folded biases (b_ih + b_hh): (1, 8Hp)
    b_all = jnp.zeros((1, 8 * Hp), jnp.float32)
    for d, (ki, kh) in enumerate((("b_ih_f", "b_hh_f"), ("b_ih_b", "b_hh_b"))):
        for k, blk in enumerate(gate_split((params[ki] + params[kh])[None, :])):
            c = (4 * d + k) * Hp
            b_all = b_all.at[:, c:c + H].set(blk)

    # hidden->hidden block-diagonal: (2Hp, 8Hp), rows [h_f | h_b]
    w_hh_bd = jnp.zeros((2 * Hp, 8 * Hp), jnp.float32)
    for d, key in enumerate(("w_hh_f", "w_hh_b")):
        r = d * Hp
        for k, blk in enumerate(gate_split(params[key].T)):           # (H, H)
            c = (4 * d + k) * Hp
            w_hh_bd = w_hh_bd.at[r:r + H, c:c + H].set(blk)

    # FC head split per direction, lane padded
    w_fc_t = params["w_fc"].T                                          # (2H, L)
    w_fc_f = jnp.zeros((Hp, Lp), jnp.float32).at[:H, :L].set(w_fc_t[:H])
    w_fc_b = jnp.zeros((Hp, Lp), jnp.float32).at[:H, :L].set(w_fc_t[H:])
    b_fc = jnp.zeros((1, Lp), jnp.float32).at[0, :L].set(params["b_fc"])

    weights = {"embedding": emb, "w_ih": w_ih_all, "w_hh": w_hh_bd, "b": b_all,
               "w_fc_f": w_fc_f, "w_fc_b": w_fc_b, "b_fc": b_fc}
    return weights, Dims(E=E, H=H, Hp=Hp, L=L, Lp=Lp)


# ----------------------------------------------------------------------------
# Full model forward (plain-JAX glue around the single Pallas kernel).
# ----------------------------------------------------------------------------
def bilstm_forward(tokens, w, dims):
    B, S = tokens.shape
    Bp = _round_up(B, 8)                                  # sublane-aligned batch

    # time-major embedding gather (no gather-then-transpose); pad batch rows
    # with token 0 -- padded rows are independent and sliced away at the end.
    tok_t = tokens.T                                      # (S, B)
    if Bp != B:
        tok_t = jnp.pad(tok_t, ((0, 0), (0, Bp - B)))
    x = jnp.take(w["embedding"], tok_t, axis=0).reshape(S * Bp, dims.E)

    kernel = functools.partial(bilstm_fused_kernel, S=S, Bp=Bp, Hp=dims.Hp)
    out_padded = pl.pallas_call(
        kernel,
        out_shape=jax.ShapeDtypeStruct((S * Bp, dims.Lp), jnp.float32),
        in_specs=[pl.BlockSpec(memory_space=pltpu.MemorySpace.VMEM)] * 7,
        out_specs=pl.BlockSpec(memory_space=pltpu.MemorySpace.VMEM),
        scratch_shapes=[
            pltpu.VMEM((S * Bp, 4 * dims.Hp), jnp.float32),   # fwd input proj
            pltpu.VMEM((S * Bp, 4 * dims.Hp), jnp.float32),   # bwd input proj
            pltpu.VMEM((S * Bp, dims.Hp), jnp.float32),       # fwd hidden states
            pltpu.VMEM((S * Bp, dims.Hp), jnp.float32),       # bwd hidden states
        ],
        compiler_params=pltpu.CompilerParams(
            vmem_limit_bytes=32 * 1024 * 1024),               # fits v5e/v6e/v7x
    )(x, w["w_ih"], w["w_hh"], w["b"], w["w_fc_f"], w["w_fc_b"], w["b_fc"])

    logits = out_padded[:, :dims.L].reshape(S, Bp, dims.L)[:, :B]
    return jnp.transpose(logits, (1, 0, 2))               # (B, S, num_labels)


# ----------------------------------------------------------------------------
# Pure-JAX reference (for correctness check).
# ----------------------------------------------------------------------------
def lstm_ref_dir(x_sbe, w_ih, w_hh, b_ih, b_hh):
    H = w_hh.shape[1]
    B = x_sbe.shape[1]

    def step(carry, x_t):
        h, c = carry
        gates = x_t @ w_ih.T + h @ w_hh.T + b_ih + b_hh
        i_g = jax.nn.sigmoid(gates[:, :H])
        f_g = jax.nn.sigmoid(gates[:, H:2 * H])
        g_g = jnp.tanh(gates[:, 2 * H:3 * H])
        o_g = jax.nn.sigmoid(gates[:, 3 * H:])
        c = f_g * c + i_g * g_g
        h = o_g * jnp.tanh(c)
        return (h, c), h

    init = (jnp.zeros((B, H), jnp.float32), jnp.zeros((B, H), jnp.float32))
    _, hs = lax.scan(step, init, x_sbe)
    return hs


def bilstm_forward_ref(tokens, params):
    embedded = jnp.take(params["embedding"], tokens, axis=0)
    x_sbe = jnp.transpose(embedded, (1, 0, 2))
    h_fwd = lstm_ref_dir(x_sbe, params["w_ih_f"], params["w_hh_f"],
                         params["b_ih_f"], params["b_hh_f"])
    h_bwd = jnp.flip(
        lstm_ref_dir(jnp.flip(x_sbe, 0), params["w_ih_b"], params["w_hh_b"],
                     params["b_ih_b"], params["b_hh_b"]), 0)
    lstm_out = jnp.transpose(jnp.concatenate([h_fwd, h_bwd], -1), (1, 0, 2))
    return lstm_out @ params["w_fc"].T + params["b_fc"]


# ----------------------------------------------------------------------------
# Deterministic parameter init (shapes from BiLSTMModel.__init__).
# ----------------------------------------------------------------------------
def init_params(key, vocab_size, embedding_dim, hidden_dim, num_labels, pad_idx=0):
    ks = jax.random.split(key, 12)
    H4 = 4 * hidden_dim
    scale = 0.1
    emb = scale * jax.random.normal(ks[0], (vocab_size, embedding_dim), jnp.float32)
    emb = emb.at[pad_idx].set(0.0)                         # padding_idx row is zero
    return {
        "embedding": emb,
        "w_ih_f": scale * jax.random.normal(ks[1], (H4, embedding_dim), jnp.float32),
        "w_hh_f": scale * jax.random.normal(ks[2], (H4, hidden_dim), jnp.float32),
        "b_ih_f": scale * jax.random.normal(ks[3], (H4,), jnp.float32),
        "b_hh_f": scale * jax.random.normal(ks[4], (H4,), jnp.float32),
        "w_ih_b": scale * jax.random.normal(ks[5], (H4, embedding_dim), jnp.float32),
        "w_hh_b": scale * jax.random.normal(ks[6], (H4, hidden_dim), jnp.float32),
        "b_ih_b": scale * jax.random.normal(ks[7], (H4,), jnp.float32),
        "b_hh_b": scale * jax.random.normal(ks[8], (H4,), jnp.float32),
        "w_fc": scale * jax.random.normal(ks[9], (num_labels, 2 * hidden_dim), jnp.float32),
        "b_fc": scale * jax.random.normal(ks[10], (num_labels,), jnp.float32),
    }


if __name__ == "__main__":
    VOCAB, EMB, HID, LABELS, PAD = 50, 32, 32, 5, 0
    B, S = 2, 8

    key = jax.random.PRNGKey(0)
    k_tok, k_par = jax.random.split(key)
    params = init_params(k_par, VOCAB, EMB, HID, LABELS, PAD)
    tokens = jax.random.randint(k_tok, (B, S), 0, VOCAB, dtype=jnp.int32)

    weights, dims = prepare_params(params)                 # one-time assembly
    fwd = jax.jit(bilstm_forward, static_argnums=2)

    logits = fwd(tokens, weights, dims)
    logits = jax.block_until_ready(logits)

    ref = bilstm_forward_ref(tokens, params)
    assert logits.shape == (B, S, LABELS)
    assert jnp.allclose(logits, ref, atol=2e-4, rtol=2e-4), "mismatch vs reference"

    print("KERNEL_OK")
</pallas_src>

<mosaic_0001>
module attributes {stable_mosaic.version = 11 : i64} {
  func.func @bilstm_fused_kernel(%arg0: memref<64x32xf32, #tpu.memory_space<vmem>>, %arg1: memref<32x256xf32, #tpu.memory_space<vmem>>, %arg2: memref<64x256xf32, #tpu.memory_space<vmem>>, %arg3: memref<1x256xf32, #tpu.memory_space<vmem>>, %arg4: memref<32x128xf32, #tpu.memory_space<vmem>>, %arg5: memref<32x128xf32, #tpu.memory_space<vmem>>, %arg6: memref<1x128xf32, #tpu.memory_space<vmem>>, %arg7: memref<64x128xf32, #tpu.memory_space<vmem>>, %arg8: memref<64x128xf32, #tpu.memory_space<vmem>>, %arg9: memref<64x128xf32, #tpu.memory_space<vmem>>, %arg10: memref<64x32xf32, #tpu.memory_space<vmem>>, %arg11: memref<64x32xf32, #tpu.memory_space<vmem>>) attributes {dimension_semantics = [], scalar_prefetch = 0 : i64, scratch_operands = 4 : i64, tpu.core_type = #tpu.core_type<tc>} {
    %c0 = arith.constant 0 : index
    %c0_0 = arith.constant 0 : index
    %0 = vector.load %arg0[%c0, %c0_0] : memref<64x32xf32, #tpu.memory_space<vmem>>, vector<64x32xf32>
    %c0_1 = arith.constant 0 : index
    %c0_2 = arith.constant 0 : index
    %1 = vector.load %arg1[%c0_1, %c0_2] : memref<32x256xf32, #tpu.memory_space<vmem>>, vector<32x256xf32>
    %cst = arith.constant dense<0.000000e+00> : vector<64x256xf32>
    %2 = tpu.matmul %0, %1, %cst {dimension_numbers = #tpu.dot_dimension_numbers<[1], [0], [0], [1], [0, 0, 1, 1], [], []>} : vector<64x32xf32>, vector<32x256xf32>, vector<64x256xf32> -> vector<64x256xf32>
    %c0_3 = arith.constant 0 : index
    %c0_4 = arith.constant 0 : index
    %3 = vector.load %arg3[%c0_3, %c0_4] : memref<1x256xf32, #tpu.memory_space<vmem>>, vector<1x256xf32>
    %4 = vector.broadcast %3 : vector<1x256xf32> to vector<64x256xf32>
    %5 = arith.addf %2, %4 : vector<64x256xf32>
    %6 = vector.extract_strided_slice %5 {offsets = [0, 0], sizes = [64, 128], strides = [1, 1]} : vector<64x256xf32> to vector<64x128xf32>
    %c0_5 = arith.constant 0 : index
    %c0_6 = arith.constant 0 : index
    %7 = vector.load %arg8[%c0_5, %c0_6] : memref<64x128xf32, #tpu.memory_space<vmem>>, vector<64x128xf32>
    tpu.vector_store %arg8[%c0_5, %c0_6], %6 {strides = array<i32>} : memref<64x128xf32, #tpu.memory_space<vmem>>, vector<64x128xf32>,
    %8 = vector.extract_strided_slice %5 {offsets = [0, 128], sizes = [64, 128], strides = [1, 1]} : vector<64x256xf32> to vector<64x128xf32>
    %c0_7 = arith.constant 0 : index
    %c0_8 = arith.constant 0 : index
    %9 = vector.load %arg9[%c0_7, %c0_8] : memref<64x128xf32, #tpu.memory_space<vmem>>, vector<64x128xf32>
    tpu.vector_store %arg9[%c0_7, %c0_8], %8 {strides = array<i32>} : memref<64x128xf32, #tpu.memory_space<vmem>>, vector<64x128xf32>,
    %c0_9 = arith.constant 0 : index
    %c0_10 = arith.constant 0 : index
    %10 = vector.load %arg2[%c0_9, %c0_10] : memref<64x256xf32, #tpu.memory_space<vmem>>, vector<64x256xf32>
    %cst_11 = arith.constant 0.000000e+00 : f32
    %11 = vector.broadcast %cst_11 : f32 to vector<8x32xf32>
    %c0_i32 = arith.constant 0 : i32
    %c7_i32 = arith.constant 7 : i32
    %12 = arith.subi %c7_i32, %c0_i32 : i32
    %c8_i32 = arith.constant 8 : i32
    %13 = arith.muli %c0_i32, %c8_i32 : i32
    %14 = tpu.assume_multiple %13, 8 : i32
    %c8_i32_12 = arith.constant 8 : i32
    %15 = arith.muli %12, %c8_i32_12 : i32
    %16 = tpu.assume_multiple %15, 8 : i32
    %17 = tpu.concatenate %11, %11 in 1 : vector<8x32xf32>, vector<8x32xf32> -> vector<8x64xf32>
    %cst_13 = arith.constant dense<0.000000e+00> : vector<8x256xf32>
    %18 = tpu.matmul %17, %10, %cst_13 {dimension_numbers = #tpu.dot_dimension_numbers<[1], [0], [0], [1], [0, 0, 1, 1], [], []>} : vector<8x64xf32>, vector<64x256xf32>, vector<8x256xf32> -> vector<8x256xf32>
    %19 = arith.index_cast %14 : i32 to index
    %c0_14 = arith.constant 0 : index
    %20 = vector.load %arg8[%19, %c0_14] : memref<64x128xf32, #tpu.memory_space<vmem>>, vector<8x128xf32>
    %21 = vector.extract_strided_slice %18 {offsets = [0, 0], sizes = [8, 128], strides = [1, 1]} : vector<8x256xf32> to vector<8x128xf32>
    %22 = arith.addf %20, %21 : vector<8x128xf32>
    %23 = vector.extract_strided_slice %22 {offsets = [0, 0], sizes = [8, 96], strides = [1, 1]} : vector<8x128xf32> to vector<8x96xf32>
    %24 = arith.negf %23 : vector<8x96xf32>
    %25 = math.exp %24 : vector<8x96xf32>
    %cst_15 = arith.constant 1.000000e+00 : f32
    %26 = vector.broadcast %cst_15 : f32 to vector<8x96xf32>
    %27 = arith.addf %26, %25 : vector<8x96xf32>
    %28 = arith.divf %26, %27 : vector<8x96xf32>
    %29 = vector.extract_strided_slice %22 {offsets = [0, 96], sizes = [8, 32], strides = [1, 1]} : vector<8x128xf32> to vector<8x32xf32>
    %30 = math.tanh %29 : vector<8x32xf32>
    %31 = vector.extract_strided_slice %28 {offsets = [0, 32], sizes = [8, 32], strides = [1, 1]} : vector<8x96xf32> to vector<8x32xf32>
    %32 = arith.mulf %31, %11 : vector<8x32xf32>
    %33 = vector.extract_strided_slice %28 {offsets = [0, 0], sizes = [8, 32], strides = [1, 1]} : vector<8x96xf32> to vector<8x32xf32>
    %34 = arith.mulf %33, %30 : vector<8x32xf32>
    %35 = arith.addf %32, %34 : vector<8x32xf32>
    %36 = vector.extract_strided_slice %28 {offsets = [0, 64], sizes = [8, 32], strides = [1, 1]} : vector<8x96xf32> to vector<8x32xf32>
    %37 = math.tanh %35 : vector<8x32xf32>
    %38 = arith.mulf %36, %37 : vector<8x32xf32>
    %39 = arith.index_cast %16 : i32 to index
    %c0_16 = arith.constant 0 : index
    %40 = vector.load %arg9[%39, %c0_16] : memref<64x128xf32, #tpu.memory_space<vmem>>, vector<8x128xf32>
    %41 = vector.extract_strided_slice %18 {offsets = [0, 128], sizes = [8, 128], strides = [1, 1]} : vector<8x256xf32> to vector<8x128xf32>
    %42 = arith.addf %40, %41 : vector<8x128xf32>
    %43 = vector.extract_strided_slice %42 {offsets = [0, 0], sizes = [8, 96], strides = [1, 1]} : vector<8x128xf32> to vector<8x96xf32>
    %44 = arith.negf %43 : vector<8x96xf32>
    %45 = math.exp %44 : vector<8x96xf32>
    %cst_17 = arith.constant 1.000000e+00 : f32
    %46 = vector.broadcast %cst_17 : f32 to vector<8x96xf32>
    %47 = arith.addf %46, %45 : vector<8x96xf32>
    %48 = arith.divf %46, %47 : vector<8x96xf32>
    %49 = vector.extract_strided_slice %42 {offsets = [0, 96], sizes = [8, 32], strides = [1, 1]} : vector<8x128xf32> to vector<8x32xf32>
    %50 = math.tanh %49 : vector<8x32xf32>
    %51 = vector.extract_strided_slice %48 {offsets = [0, 32], sizes = [8, 32], strides = [1, 1]} : vector<8x96xf32> to vector<8x32xf32>
    %52 = arith.mulf %51, %11 : vector<8x32xf32>
    %53 = vector.extract_strided_slice %48 {offsets = [0, 0], sizes = [8, 32], strides = [1, 1]} : vector<8x96xf32> to vector<8x32xf32>
    %54 = arith.mulf %53, %50 : vector<8x32xf32>
    %55 = arith.addf %52, %54 : vector<8x32xf32>
    %56 = vector.extract_strided_slice %48 {offsets = [0, 64], sizes = [8, 32], strides = [1, 1]} : vector<8x96xf32> to vector<8x32xf32>
    %57 = math.tanh %55 : vector<8x32xf32>
    %58 = arith.mulf %56, %57 : vector<8x32xf32>
    %59 = arith.index_cast %14 : i32 to index
    %c0_18 = arith.constant 0 : index
    %60 = vector.load %arg10[%59, %c0_18] : memref<64x32xf32, #tpu.memory_space<vmem>>, vector<8x32xf32>
    tpu.vector_store %arg10[%59, %c0_18], %38 {strides = array<i32>} : memref<64x32xf32, #tpu.memory_space<vmem>>, vector<8x32xf32>,
    %61 = arith.index_cast %16 : i32 to index
    %c0_19 = arith.constant 0 : index
    %62 = vector.load %arg11[%61, %c0_19] : memref<64x32xf32, #tpu.memory_space<vmem>>, vector<8x32xf32>
    tpu.vector_store %arg11[%61, %c0_19], %58 {strides = array<i32>} : memref<64x32xf32, #tpu.memory_space<vmem>>, vector<8x32xf32>,
    %c1_i32 = arith.constant 1 : i32
    %c7_i32_20 = arith.constant 7 : i32
    %63 = arith.subi %c7_i32_20, %c1_i32 : i32
    %c8_i32_21 = arith.constant 8 : i32
    %64 = arith.muli %c1_i32, %c8_i32_21 : i32
    %65 = tpu.assume_multiple %64, 8 : i32
    %c8_i32_22 = arith.constant 8 : i32
    %66 = arith.muli %63, %c8_i32_22 : i32
    %67 = tpu.assume_multiple %66, 8 : i32
    %68 = tpu.concatenate %38, %58 in 1 : vector<8x32xf32>, vector<8x32xf32> -> vector<8x64xf32>
    %cst_23 = arith.constant dense<0.000000e+00> : vector<8x256xf32>
    %69 = tpu.matmul %68, %10, %cst_23 {dimension_numbers = #tpu.dot_dimension_numbers<[1], [0], [0], [1], [0, 0, 1, 1], [], []>} : vector<8x64xf32>, vector<64x256xf32>, vector<8x256xf32> -> vector<8x256xf32>
    %70 = arith.index_cast %65 : i32 to index
    %c0_24 = arith.constant 0 : index
    %71 = vector.load %arg8[%70, %c0_24] : memref<64x128xf32, #tpu.memory_space<vmem>>, vector<8x128xf32>
    %72 = vector.extract_strided_slice %69 {offsets = [0, 0], sizes = [8, 128], strides = [1, 1]} : vector<8x256xf32> to vector<8x128xf32>
    %73 = arith.addf %71, %72 : vector<8x128xf32>
    %74 = vector.extract_strided_slice %73 {offsets = [0, 0], sizes = [8, 96], strides = [1, 1]} : vector<8x128xf32> to vector<8x96xf32>
    %75 = arith.negf %74 : vector<8x96xf32>
    %76 = math.exp %75 : vector<8x96xf32>
    %cst_25 = arith.constant 1.000000e+00 : f32
    %77 = vector.broadcast %cst_25 : f32 to vector<8x96xf32>
    %78 = arith.addf %77, %76 : vector<8x96xf32>
    %79 = arith.divf %77, %78 : vector<8x96xf32>
    %80 = vector.extract_strided_slice %73 {offsets = [0, 96], sizes = [8, 32], strides = [1, 1]} : vector<8x128xf32> to vector<8x32xf32>
    %81 = math.tanh %80 : vector<8x32xf32>
    %82 = vector.extract_strided_slice %79 {offsets = [0, 32], sizes = [8, 32], strides = [1, 1]} : vector<8x96xf32> to vector<8x32xf32>
    %83 = arith.mulf %82, %35 : vector<8x32xf32>
    %84 = vector.extract_strided_slice %79 {offsets = [0, 0], sizes = [8, 32], strides = [1, 1]} : vector<8x96xf32> to vector<8x32xf32>
    %85 = arith.mulf %84, %81 : vector<8x32xf32>
    %86 = arith.addf %83, %85 : vector<8x32xf32>
    %87 = vector.extract_strided_slice %79 {offsets = [0, 64], sizes = [8, 32], strides = [1, 1]} : vector<8x96xf32> to vector<8x32xf32>
    %88 = math.tanh %86 : vector<8x32xf32>
    %89 = arith.mulf %87, %88 : vector<8x32xf32>
    %90 = arith.index_cast %67 : i32 to index
    %c0_26 = arith.constant 0 : index
    %91 = vector.load %arg9[%90, %c0_26] : memref<64x128xf32, #tpu.memory_space<vmem>>, vector<8x128xf32>
    %92 = vector.extract_strided_slice %69 {offsets = [0, 128], sizes = [8, 128], strides = [1, 1]} : vector<8x256xf32> to vector<8x128xf32>
    %93 = arith.addf %91, %92 : vector<8x128xf32>
    %94 = vector.extract_strided_slice %93 {offsets = [0, 0], sizes = [8, 96], strides = [1, 1]} : vector<8x128xf32> to vector<8x96xf32>
    %95 = arith.negf %94 : vector<8x96xf32>
    %96 = math.exp %95 : vector<8x96xf32>
    %cst_27 = arith.constant 1.000000e+00 : f32
    %97 = vector.broadcast %cst_27 : f32 to vector<8x96xf32>
    %98 = arith.addf %97, %96 : vector<8x96xf32>
    %99 = arith.divf %97, %98 : vector<8x96xf32>
    %100 = vector.extract_strided_slice %93 {offsets = [0, 96], sizes = [8, 32], strides = [1, 1]} : vector<8x128xf32> to vector<8x32xf32>
    %101 = math.tanh %100 : vector<8x32xf32>
    %102 = vector.extract_strided_slice %99 {offsets = [0, 32], sizes = [8, 32], strides = [1, 1]} : vector<8x96xf32> to vector<8x32xf32>
    %103 = arith.mulf %102, %55 : vector<8x32xf32>
    %104 = vector.extract_strided_slice %99 {offsets = [0, 0], sizes = [8, 32], strides = [1, 1]} : vector<8x96xf32> to vector<8x32xf32>
    %105 = arith.mulf %104, %101 : vector<8x32xf32>
    %106 = arith.addf %103, %105 : vector<8x32xf32>
    %107 = vector.extract_strided_slice %99 {offsets = [0, 64], sizes = [8, 32], strides = [1, 1]} : vector<8x96xf32> to vector<8x32xf32>
    %108 = math.tanh %106 : vector<8x32xf32>
    %109 = arith.mulf %107, %108 : vector<8x32xf32>
    %110 = arith.index_cast %65 : i32 to index
    %c0_28 = arith.constant 0 : index
    %111 = vector.load %arg10[%110, %c0_28] : memref<64x32xf32, #tpu.memory_space<vmem>>, vector<8x32xf32>
    tpu.vector_store %arg10[%110, %c0_28], %89 {strides = array<i32>} : memref<64x32xf32, #tpu.memory_space<vmem>>, vector<8x32xf32>,
    %112 = arith.index_cast %67 : i32 to index
    %c0_29 = arith.constant 0 : index
    %113 = vector.load %arg11[%112, %c0_29] : memref<64x32xf32, #tpu.memory_space<vmem>>, vector<8x32xf32>
    tpu.vector_store %arg11[%112, %c0_29], %109 {strides = array<i32>} : memref<64x32xf32, #tpu.memory_space<vmem>>, vector<8x32xf32>,
    %c2_i32 = arith.constant 2 : i32
    %c7_i32_30 = arith.constant 7 : i32
    %114 = arith.subi %c7_i32_30, %c2_i32 : i32
    %c8_i32_31 = arith.constant 8 : i32
    %115 = arith.muli %c2_i32, %c8_i32_31 : i32
    %116 = tpu.assume_multiple %115, 8 : i32
    %c8_i32_32 = arith.constant 8 : i32
    %117 = arith.muli %114, %c8_i32_32 : i32
    %118 = tpu.assume_multiple %117, 8 : i32
    %119 = tpu.concatenate %89, %109 in 1 : vector<8x32xf32>, vector<8x32xf32> -> vector<8x64xf32>
    %cst_33 = arith.constant dense<0.000000e+00> : vector<8x256xf32>
    %120 = tpu.matmul %119, %10, %cst_33 {dimension_numbers = #tpu.dot_dimension_numbers<[1], [0], [0], [1], [0, 0, 1, 1], [], []>} : vector<8x64xf32>, vector<64x256xf32>, vector<8x256xf32> -> vector<8x256xf32>
    %121 = arith.index_cast %116 : i32 to index
    %c0_34 = arith.constant 0 : index
    %122 = vector.load %arg8[%121, %c0_34] : memref<64x128xf32, #tpu.memory_space<vmem>>, vector<8x128xf32>
    %123 = vector.extract_strided_slice %120 {offsets = [0, 0], sizes = [8, 128], strides = [1, 1]} : vector<8x256xf32> to vector<8x128xf32>
    %124 = arith.addf %122, %123 : vector<8x128xf32>
    %125 = vector.extract_strided_slice %124 {offsets = [0, 0], sizes = [8, 96], strides = [1, 1]} : vector<8x128xf32> to vector<8x96xf32>
    %126 = arith.negf %125 : vector<8x96xf32>
    %127 = math.exp %126 : vector<8x96xf32>
    %cst_35 = arith.constant 1.000000e+00 : f32
    %128 = vector.broadcast %cst_35 : f32 to vector<8x96xf32>
    %129 = arith.addf %128, %127 : vector<8x96xf32>
    %130 = arith.divf %128, %129 : vector<8x96xf32>
    %131 = vector.extract_strided_slice %124 {offsets = [0, 96], sizes = [8, 32], strides = [1, 1]} : vector<8x128xf32> to vector<8x32xf32>
    %132 = math.tanh %131 : vector<8x32xf32>
    %133 = vector.extract_strided_slice %130 {offsets = [0, 32], sizes = [8, 32], strides = [1, 1]} : vector<8x96xf32> to vector<8x32xf32>
    %134 = arith.mulf %133, %86 : vector<8x32xf32>
    %135 = vector.extract_strided_slice %130 {offsets = [0, 0], sizes = [8, 32], strides = [1, 1]} : vector<8x96xf32> to vector<8x32xf32>
    %136 = arith.mulf %135, %132 : vector<8x32xf32>
    %137 = arith.addf %134, %136 : vector<8x32xf32>
    %138 = vector.extract_strided_slice %130 {offsets = [0, 64], sizes = [8, 32], strides = [1, 1]} : vector<8x96xf32> to vector<8x32xf32>
    %139 = math.tanh %137 : vector<8x32xf32>
    %140 = arith.mulf %138, %139 : vector<8x32xf32>
    %141 = arith.index_cast %118 : i32 to index
    %c0_36 = arith.constant 0 : index
    %142 = vector.load %arg9[%141, %c0_36] : memref<64x128xf32, #tpu.memory_space<vmem>>, vector<8x128xf32>
    %143 = vector.extract_strided_slice %120 {offsets = [0, 128], sizes = [8, 128], strides = [1, 1]} : vector<8x256xf32> to vector<8x128xf32>
    %144 = arith.addf %142, %143 : vector<8x128xf32>
    %145 = vector.extract_strided_slice %144 {offsets = [0, 0], sizes = [8, 96], strides = [1, 1]} : vector<8x128xf32> to vector<8x96xf32>
    %146 = arith.negf %145 : vector<8x96xf32>
    %147 = math.exp %146 : vector<8x96xf32>
    %cst_37 = arith.constant 1.000000e+00 : f32
    %148 = vector.broadcast %cst_37 : f32 to vector<8x96xf32>
    %149 = arith.addf %148, %147 : vector<8x96xf32>
    %150 = arith.divf %148, %149 : vector<8x96xf32>
    %151 = vector.extract_strided_slice %144 {offsets = [0, 96], sizes = [8, 32], strides = [1, 1]} : vector<8x128xf32> to vector<8x32xf32>
    %152 = math.tanh %151 : vector<8x32xf32>
    %153 = vector.extract_strided_slice %150 {offsets = [0, 32], sizes = [8, 32], strides = [1, 1]} : vector<8x96xf32> to vector<8x32xf32>
    %154 = arith.mulf %153, %106 : vector<8x32xf32>
    %155 = vector.extract_strided_slice %150 {offsets = [0, 0], sizes = [8, 32], strides = [1, 1]} : vector<8x96xf32> to vector<8x32xf32>
    %156 = arith.mulf %155, %152 : vector<8x32xf32>
    %157 = arith.addf %154, %156 : vector<8x32xf32>
    %158 = vector.extract_strided_slice %150 {offsets = [0, 64], sizes = [8, 32], strides = [1, 1]} : vector<8x96xf32> to vector<8x32xf32>
    %159 = math.tanh %157 : vector<8x32xf32>
    %160 = arith.mulf %158, %159 : vector<8x32xf32>
    %161 = arith.index_cast %116 : i32 to index
    %c0_38 = arith.constant 0 : index
    %162 = vector.load %arg10[%161, %c0_38] : memref<64x32xf32, #tpu.memory_space<vmem>>, vector<8x32xf32>
    tpu.vector_store %arg10[%161, %c0_38], %140 {strides = array<i32>} : memref<64x32xf32, #tpu.memory_space<vmem>>, vector<8x32xf32>,
    %163 = arith.index_cast %118 : i32 to index
    %c0_39 = arith.constant 0 : index
    %164 = vector.load %arg11[%163, %c0_39] : memref<64x32xf32, #tpu.memory_space<vmem>>, vector<8x32xf32>
    tpu.vector_store %arg11[%163, %c0_39], %160 {strides = array<i32>} : memref<64x32xf32, #tpu.memory_space<vmem>>, vector<8x32xf32>,
    %c3_i32 = arith.constant 3 : i32
    %c7_i32_40 = arith.constant 7 : i32
    %165 = arith.subi %c7_i32_40, %c3_i32 : i32
    %c8_i32_41 = arith.constant 8 : i32
    %166 = arith.muli %c3_i32, %c8_i32_41 : i32
    %167 = tpu.assume_multiple %166, 8 : i32
    %c8_i32_42 = arith.constant 8 : i32
    %168 = arith.muli %165, %c8_i32_42 : i32
    %169 = tpu.assume_multiple %168, 8 : i32
    %170 = tpu.concatenate %140, %160 in 1 : vector<8x32xf32>, vector<8x32xf32> -> vector<8x64xf32>
    %cst_43 = arith.constant dense<0.000000e+00> : vector<8x256xf32>
    %171 = tpu.matmul %170, %10, %cst_43 {dimension_numbers = #tpu.dot_dimension_numbers<[1], [0], [0], [1], [0, 0, 1, 1], [], []>} : vector<8x64xf32>, vector<64x256xf32>, vector<8x256xf32> -> vector<8x256xf32>
    %172 = arith.index_cast %167 : i32 to index
    %c0_44 = arith.constant 0 : index
    %173 = vector.load %arg8[%172, %c0_44] : memref<64x128xf32, #tpu.memory_space<vmem>>, vector<8x128xf32>
    %174 = vector.extract_strided_slice %171 {offsets = [0, 0], sizes = [8, 128], strides = [1, 1]} : vector<8x256xf32> to vector<8x128xf32>
    %175 = arith.addf %173, %174 : vector<8x128xf32>
    %176 = vector.extract_strided_slice %175 {offsets = [0, 0], sizes = [8, 96], strides = [1, 1]} : vector<8x128xf32> to vector<8x96xf32>
    %177 = arith.negf %176 : vector<8x96xf32>
    %178 = math.exp %177 : vector<8x96xf32>
    %cst_45 = arith.constant 1.000000e+00 : f32
    %179 = vector.broadcast %cst_45 : f32 to vector<8x96xf32>
    %180 = arith.addf %179, %178 : vector<8x96xf32>
    %181 = arith.divf %179, %180 : vector<8x96xf32>
    %182 = vector.extract_strided_slice %175 {offsets = [0, 96], sizes = [8, 32], strides = [1, 1]} : vector<8x128xf32> to vector<8x32xf32>
    %183 = math.tanh %182 : vector<8x32xf32>
    %184 = vector.extract_strided_slice %181 {offsets = [0, 32], sizes = [8, 32], strides = [1, 1]} : vector<8x96xf32> to vector<8x32xf32>
    %185 = arith.mulf %184, %137 : vector<8x32xf32>
    %186 = vector.extract_strided_slice %181 {offsets = [0, 0], sizes = [8, 32], strides = [1, 1]} : vector<8x96xf32> to vector<8x32xf32>
    %187 = arith.mulf %186, %183 : vector<8x32xf32>
    %188 = arith.addf %185, %187 : vector<8x32xf32>
    %189 = vector.extract_strided_slice %181 {offsets = [0, 64], sizes = [8, 32], strides = [1, 1]} : vector<8x96xf32> to vector<8x32xf32>
    %190 = math.tanh %188 : vector<8x32xf32>
    %191 = arith.mulf %189, %190 : vector<8x32xf32>
    %192 = arith.index_cast %169 : i32 to index
    %c0_46 = arith.constant 0 : index
    %193 = vector.load %arg9[%192, %c0_46] : memref<64x128xf32, #tpu.memory_space<vmem>>, vector<8x128xf32>
    %194 = vector.extract_strided_slice %171 {offsets = [0, 128], sizes = [8, 128], strides = [1, 1]} : vector<8x256xf32> to vector<8x128xf32>
    %195 = arith.addf %193, %194 : vector<8x128xf32>
    %196 = vector.extract_strided_slice %195 {offsets = [0, 0], sizes = [8, 96], strides = [1, 1]} : vector<8x128xf32> to vector<8x96xf32>
    %197 = arith.negf %196 : vector<8x96xf32>
    %198 = math.exp %197 : vector<8x96xf32>
    %cst_47 = arith.constant 1.000000e+00 : f32
    %199 = vector.broadcast %cst_47 : f32 to vector<8x96xf32>
    %200 = arith.addf %199, %198 : vector<8x96xf32>
    %201 = arith.divf %199, %200 : vector<8x96xf32>
    %202 = vector.extract_strided_slice %195 {offsets = [0, 96], sizes = [8, 32], strides = [1, 1]} : vector<8x128xf32> to vector<8x32xf32>
    %203 = math.tanh %202 : vector<8x32xf32>
    %204 = vector.extract_strided_slice %201 {offsets = [0, 32], sizes = [8, 32], strides = [1, 1]} : vector<8x96xf32> to vector<8x32xf32>
    %205 = arith.mulf %204, %157 : vector<8x32xf32>
    %206 = vector.extract_strided_slice %201 {offsets = [0, 0], sizes = [8, 32], strides = [1, 1]} : vector<8x96xf32> to vector<8x32xf32>
    %207 = arith.mulf %206, %203 : vector<8x32xf32>
    %208 = arith.addf %205, %207 : vector<8x32xf32>
    %209 = vector.extract_strided_slice %201 {offsets = [0, 64], sizes = [8, 32], strides = [1, 1]} : vector<8x96xf32> to vector<8x32xf32>
    %210 = math.tanh %208 : vector<8x32xf32>
    %211 = arith.mulf %209, %210 : vector<8x32xf32>
    %212 = arith.index_cast %167 : i32 to index
    %c0_48 = arith.constant 0 : index
    %213 = vector.load %arg10[%212, %c0_48] : memref<64x32xf32, #tpu.memory_space<vmem>>, vector<8x32xf32>
    tpu.vector_store %arg10[%212, %c0_48], %191 {strides = array<i32>} : memref<64x32xf32, #tpu.memory_space<vmem>>, vector<8x32xf32>,
    %214 = arith.index_cast %169 : i32 to index
    %c0_49 = arith.constant 0 : index
    %215 = vector.load %arg11[%214, %c0_49] : memref<64x32xf32, #tpu.memory_space<vmem>>, vector<8x32xf32>
    tpu.vector_store %arg11[%214, %c0_49], %211 {strides = array<i32>} : memref<64x32xf32, #tpu.memory_space<vmem>>, vector<8x32xf32>,
    %c4_i32 = arith.constant 4 : i32
    %c7_i32_50 = arith.constant 7 : i32
    %216 = arith.subi %c7_i32_50, %c4_i32 : i32
    %c8_i32_51 = arith.constant 8 : i32
    %217 = arith.muli %c4_i32, %c8_i32_51 : i32
    %218 = tpu.assume_multiple %217, 8 : i32
    %c8_i32_52 = arith.constant 8 : i32
    %219 = arith.muli %216, %c8_i32_52 : i32
    %220 = tpu.assume_multiple %219, 8 : i32
    %221 = tpu.concatenate %191, %211 in 1 : vector<8x32xf32>, vector<8x32xf32> -> vector<8x64xf32>
    %cst_53 = arith.constant dense<0.000000e+00> : vector<8x256xf32>
    %222 = tpu.matmul %221, %10, %cst_53 {dimension_numbers = #tpu.dot_dimension_numbers<[1], [0], [0], [1], [0, 0, 1, 1], [], []>} : vector<8x64xf32>, vector<64x256xf32>, vector<8x256xf32> -> vector<8x256xf32>
    %223 = arith.index_cast %218 : i32 to index
    %c0_54 = arith.constant 0 : index
    %224 = vector.load %arg8[%223, %c0_54] : memref<64x128xf32, #tpu.memory_space<vmem>>, vector<8x128xf32>
    %225 = vector.extract_strided_slice %222 {offsets = [0, 0], sizes = [8, 128], strides = [1, 1]} : vector<8x256xf32> to vector<8x128xf32>
    %226 = arith.addf %224, %225 : vector<8x128xf32>
    %227 = vector.extract_strided_slice %226 {offsets = [0, 0], sizes = [8, 96], strides = [1, 1]} : vector<8x128xf32> to vector<8x96xf32>
    %228 = arith.negf %227 : vector<8x96xf32>
    %229 = math.exp %228 : vector<8x96xf32>
    %cst_55 = arith.constant 1.000000e+00 : f32
    %230 = vector.broadcast %cst_55 : f32 to vector<8x96xf32>
    %231 = arith.addf %230, %229 : vector<8x96xf32>
    %232 = arith.divf %230, %231 : vector<8x96xf32>
    %233 = vector.extract_strided_slice %226 {offsets = [0, 96], sizes = [8, 32], strides = [1, 1]} : vector<8x128xf32> to vector<8x32xf32>
    %234 = math.tanh %233 : vector<8x32xf32>
    %235 = vector.extract_strided_slice %232 {offsets = [0, 32], sizes = [8, 32], strides = [1, 1]} : vector<8x96xf32> to vector<8x32xf32>
    %236 = arith.mulf %235, %188 : vector<8x32xf32>
    %237 = vector.extract_strided_slice %232 {offsets = [0, 0], sizes = [8, 32], strides = [1, 1]} : vector<8x96xf32> to vector<8x32xf32>
    %238 = arith.mulf %237, %234 : vector<8x32xf32>
    %239 = arith.addf %236, %238 : vector<8x32xf32>
    %240 = vector.extract_strided_slice %232 {offsets = [0, 64], sizes = [8, 32], strides = [1, 1]} : vector<8x96xf32> to vector<8x32xf32>
    %241 = math.tanh %239 : vector<8x32xf32>
    %242 = arith.mulf %240, %241 : vector<8x32xf32>
    %243 = arith.index_cast %220 : i32 to index
    %c0_56 = arith.constant 0 : index
    %244 = vector.load %arg9[%243, %c0_56] : memref<64x128xf32, #tpu.memory_space<vmem>>, vector<8x128xf32>
    %245 = vector.extract_strided_slice %222 {offsets = [0, 128], sizes = [8, 128], strides = [1, 1]} : vector<8x256xf32> to vector<8x128xf32>
    %246 = arith.addf %244, %245 : vector<8x128xf32>
    %247 = vector.extract_strided_slice %246 {offsets = [0, 0], sizes = [8, 96], strides = [1, 1]} : vector<8x128xf32> to vector<8x96xf32>
    %248 = arith.negf %247 : vector<8x96xf32>
    %249 = math.exp %248 : vector<8x96xf32>
    %cst_57 = arith.constant 1.000000e+00 : f32
    %250 = vector.broadcast %cst_57 : f32 to vector<8x96xf32>
    %251 = arith.addf %250, %249 : vector<8x96xf32>
    %252 = arith.divf %250, %251 : vector<8x96xf32>
    %253 = vector.extract_strided_slice %246 {offsets = [0, 96], sizes = [8, 32], strides = [1, 1]} : vector<8x128xf32> to vector<8x32xf32>
    %254 = math.tanh %253 : vector<8x32xf32>
    %255 = vector.extract_strided_slice %252 {offsets = [0, 32], sizes = [8, 32], strides = [1, 1]} : vector<8x96xf32> to vector<8x32xf32>
    %256 = arith.mulf %255, %208 : vector<8x32xf32>
    %257 = vector.extract_strided_slice %252 {offsets = [0, 0], sizes = [8, 32], strides = [1, 1]} : vector<8x96xf32> to vector<8x32xf32>
    %258 = arith.mulf %257, %254 : vector<8x32xf32>
    %259 = arith.addf %256, %258 : vector<8x32xf32>
    %260 = vector.extract_strided_slice %252 {offsets = [0, 64], sizes = [8, 32], strides = [1, 1]} : vector<8x96xf32> to vector<8x32xf32>
    %261 = math.tanh %259 : vector<8x32xf32>
    %262 = arith.mulf %260, %261 : vector<8x32xf32>
    %263 = arith.index_cast %218 : i32 to index
    %c0_58 = arith.constant 0 : index
    %264 = vector.load %arg10[%263, %c0_58] : memref<64x32xf32, #tpu.memory_space<vmem>>, vector<8x32xf32>
    tpu.vector_store %arg10[%263, %c0_58], %242 {strides = array<i32>} : memref<64x32xf32, #tpu.memory_space<vmem>>, vector<8x32xf32>,
    %265 = arith.index_cast %220 : i32 to index
    %c0_59 = arith.constant 0 : index
    %266 = vector.load %arg11[%265, %c0_59] : memref<64x32xf32, #tpu.memory_space<vmem>>, vector<8x32xf32>
    tpu.vector_store %arg11[%265, %c0_59], %262 {strides = array<i32>} : memref<64x32xf32, #tpu.memory_space<vmem>>, vector<8x32xf32>,
    %c5_i32 = arith.constant 5 : i32
    %c7_i32_60 = arith.constant 7 : i32
    %267 = arith.subi %c7_i32_60, %c5_i32 : i32
    %c8_i32_61 = arith.constant 8 : i32
    %268 = arith.muli %c5_i32, %c8_i32_61 : i32
    %269 = tpu.assume_multiple %268, 8 : i32
    %c8_i32_62 = arith.constant 8 : i32
    %270 = arith.muli %267, %c8_i32_62 : i32
    %271 = tpu.assume_multiple %270, 8 : i32
    %272 = tpu.concatenate %242, %262 in 1 : vector<8x32xf32>, vector<8x32xf32> -> vector<8x64xf32>
    %cst_63 = arith.constant dense<0.000000e+00> : vector<8x256xf32>
    %273 = tpu.matmul %272, %10, %cst_63 {dimension_numbers = #tpu.dot_dimension_numbers<[1], [0], [0], [1], [0, 0, 1, 1], [], []>} : vector<8x64xf32>, vector<64x256xf32>, vector<8x256xf32> -> vector<8x256xf32>
    %274 = arith.index_cast %269 : i32 to index
    %c0_64 = arith.constant 0 : index
    %275 = vector.load %arg8[%274, %c0_64] : memref<64x128xf32, #tpu.memory_space<vmem>>, vector<8x128xf32>
    %276 = vector.extract_strided_slice %273 {offsets = [0, 0], sizes = [8, 128], strides = [1, 1]} : vector<8x256xf32> to vector<8x128xf32>
    %277 = arith.addf %275, %276 : vector<8x128xf32>
    %278 = vector.extract_strided_slice %277 {offsets = [0, 0], sizes = [8, 96], strides = [1, 1]} : vector<8x128xf32> to vector<8x96xf32>
    %279 = arith.negf %278 : vector<8x96xf32>
    %280 = math.exp %279 : vector<8x96xf32>
    %cst_65 = arith.constant 1.000000e+00 : f32
    %281 = vector.broadcast %cst_65 : f32 to vector<8x96xf32>
    %282 = arith.addf %281, %280 : vector<8x96xf32>
    %283 = arith.divf %281, %282 : vector<8x96xf32>
    %284 = vector.extract_strided_slice %277 {offsets = [0, 96], sizes = [8, 32], strides = [1, 1]} : vector<8x128xf32> to vector<8x32xf32>
    %285 = math.tanh %284 : vector<8x32xf32>
    %286 = vector.extract_strided_slice %283 {offsets = [0, 32], sizes = [8, 32], strides = [1, 1]} : vector<8x96xf32> to vector<8x32xf32>
    %287 = arith.mulf %286, %239 : vector<8x32xf32>
    %288 = vector.extract_strided_slice %283 {offsets = [0, 0], sizes = [8, 32], strides = [1, 1]} : vector<8x96xf32> to vector<8x32xf32>
    %289 = arith.mulf %288, %285 : vector<8x32xf32>
    %290 = arith.addf %287, %289 : vector<8x32xf32>
    %291 = vector.extract_strided_slice %283 {offsets = [0, 64], sizes = [8, 32], strides = [1, 1]} : vector<8x96xf32> to vector<8x32xf32>
    %292 = math.tanh %290 : vector<8x32xf32>
    %293 = arith.mulf %291, %292 : vector<8x32xf32>
    %294 = arith.index_cast %271 : i32 to index
    %c0_66 = arith.constant 0 : index
    %295 = vector.load %arg9[%294, %c0_66] : memref<64x128xf32, #tpu.memory_space<vmem>>, vector<8x128xf32>
    %296 = vector.extract_strided_slice %273 {offsets = [0, 128], sizes = [8, 128], strides = [1, 1]} : vector<8x256xf32> to vector<8x128xf32>
    %297 = arith.addf %295, %296 : vector<8x128xf32>
    %298 = vector.extract_strided_slice %297 {offsets = [0, 0], sizes = [8, 96], strides = [1, 1]} : vector<8x128xf32> to vector<8x96xf32>
    %299 = arith.negf %298 : vector<8x96xf32>
    %300 = math.exp %299 : vector<8x96xf32>
    %cst_67 = arith.constant 1.000000e+00 : f32
    %301 = vector.broadcast %cst_67 : f32 to vector<8x96xf32>
    %302 = arith.addf %301, %300 : vector<8x96xf32>
    %303 = arith.divf %301, %302 : vector<8x96xf32>
    %304 = vector.extract_strided_slice %297 {offsets = [0, 96], sizes = [8, 32], strides = [1, 1]} : vector<8x128xf32> to vector<8x32xf32>
    %305 = math.tanh %304 : vector<8x32xf32>
    %306 = vector.extract_strided_slice %303 {offsets = [0, 32], sizes = [8, 32], strides = [1, 1]} : vector<8x96xf32> to vector<8x32xf32>
    %307 = arith.mulf %306, %259 : vector<8x32xf32>
    %308 = vector.extract_strided_slice %303 {offsets = [0, 0], sizes = [8, 32], strides = [1, 1]} : vector<8x96xf32> to vector<8x32xf32>
    %309 = arith.mulf %308, %305 : vector<8x32xf32>
    %310 = arith.addf %307, %309 : vector<8x32xf32>
    %311 = vector.extract_strided_slice %303 {offsets = [0, 64], sizes = [8, 32], strides = [1, 1]} : vector<8x96xf32> to vector<8x32xf32>
    %312 = math.tanh %310 : vector<8x32xf32>
    %313 = arith.mulf %311, %312 : vector<8x32xf32>
    %314 = arith.index_cast %269 : i32 to index
    %c0_68 = arith.constant 0 : index
    %315 = vector.load %arg10[%314, %c0_68] : memref<64x32xf32, #tpu.memory_space<vmem>>, vector<8x32xf32>
    tpu.vector_store %arg10[%314, %c0_68], %293 {strides = array<i32>} : memref<64x32xf32, #tpu.memory_space<vmem>>, vector<8x32xf32>,
    %316 = arith.index_cast %271 : i32 to index
    %c0_69 = arith.constant 0 : index
    %317 = vector.load %arg11[%316, %c0_69] : memref<64x32xf32, #tpu.memory_space<vmem>>, vector<8x32xf32>
    tpu.vector_store %arg11[%316, %c0_69], %313 {strides = array<i32>} : memref<64x32xf32, #tpu.memory_space<vmem>>, vector<8x32xf32>,
    %c6_i32 = arith.constant 6 : i32
    %c7_i32_70 = arith.constant 7 : i32
    %318 = arith.subi %c7_i32_70, %c6_i32 : i32
    %c8_i32_71 = arith.constant 8 : i32
    %319 = arith.muli %c6_i32, %c8_i32_71 : i32
    %320 = tpu.assume_multiple %319, 8 : i32
    %c8_i32_72 = arith.constant 8 : i32
    %321 = arith.muli %318, %c8_i32_72 : i32
    %322 = tpu.assume_multiple %321, 8 : i32
    %323 = tpu.concatenate %293, %313 in 1 : vector<8x32xf32>, vector<8x32xf32> -> vector<8x64xf32>
    %cst_73 = arith.constant dense<0.000000e+00> : vector<8x256xf32>
    %324 = tpu.matmul %323, %10, %cst_73 {dimension_numbers = #tpu.dot_dimension_numbers<[1], [0], [0], [1], [0, 0, 1, 1], [], []>} : vector<8x64xf32>, vector<64x256xf32>, vector<8x256xf32> -> vector<8x256xf32>
    %325 = arith.index_cast %320 : i32 to index
    %c0_74 = arith.constant 0 : index
    %326 = vector.load %arg8[%325, %c0_74] : memref<64x128xf32, #tpu.memory_space<vmem>>, vector<8x128xf32>
    %327 = vector.extract_strided_slice %324 {offsets = [0, 0], sizes = [8, 128], strides = [1, 1]} : vector<8x256xf32> to vector<8x128xf32>
    %328 = arith.addf %326, %327 : vector<8x128xf32>
    %329 = vector.extract_strided_slice %328 {offsets = [0, 0], sizes = [8, 96], strides = [1, 1]} : vector<8x128xf32> to vector<8x96xf32>
    %330 = arith.negf %329 : vector<8x96xf32>
    %331 = math.exp %330 : vector<8x96xf32>
    %cst_75 = arith.constant 1.000000e+00 : f32
    %332 = vector.broadcast %cst_75 : f32 to vector<8x96xf32>
    %333 = arith.addf %332, %331 : vector<8x96xf32>
    %334 = arith.divf %332, %333 : vector<8x96xf32>
    %335 = vector.extract_strided_slice %328 {offsets = [0, 96], sizes = [8, 32], strides = [1, 1]} : vector<8x128xf32> to vector<8x32xf32>
    %336 = math.tanh %335 : vector<8x32xf32>
    %337 = vector.extract_strided_slice %334 {offsets = [0, 32], sizes = [8, 32], strides = [1, 1]} : vector<8x96xf32> to vector<8x32xf32>
    %338 = arith.mulf %337, %290 : vector<8x32xf32>
    %339 = vector.extract_strided_slice %334 {offsets = [0, 0], sizes = [8, 32], strides = [1, 1]} : vector<8x96xf32> to vector<8x32xf32>
    %340 = arith.mulf %339, %336 : vector<8x32xf32>
    %341 = arith.addf %338, %340 : vector<8x32xf32>
    %342 = vector.extract_strided_slice %334 {offsets = [0, 64], sizes = [8, 32], strides = [1, 1]} : vector<8x96xf32> to vector<8x32xf32>
    %343 = math.tanh %341 : vector<8x32xf32>
    %344 = arith.mulf %342, %343 : vector<8x32xf32>
    %345 = arith.index_cast %322 : i32 to index
    %c0_76 = arith.constant 0 : index
    %346 = vector.load %arg9[%345, %c0_76] : memref<64x128xf32, #tpu.memory_space<vmem>>, vector<8x128xf32>
    %347 = vector.extract_strided_slice %324 {offsets = [0, 128], sizes = [8, 128], strides = [1, 1]} : vector<8x256xf32> to vector<8x128xf32>
    %348 = arith.addf %346, %347 : vector<8x128xf32>
    %349 = vector.extract_strided_slice %348 {offsets = [0, 0], sizes = [8, 96], strides = [1, 1]} : vector<8x128xf32> to vector<8x96xf32>
    %350 = arith.negf %349 : vector<8x96xf32>
    %351 = math.exp %350 : vector<8x96xf32>
    %cst_77 = arith.constant 1.000000e+00 : f32
    %352 = vector.broadcast %cst_77 : f32 to vector<8x96xf32>
    %353 = arith.addf %352, %351 : vector<8x96xf32>
    %354 = arith.divf %352, %353 : vector<8x96xf32>
    %355 = vector.extract_strided_slice %348 {offsets = [0, 96], sizes = [8, 32], strides = [1, 1]} : vector<8x128xf32> to vector<8x32xf32>
    %356 = math.tanh %355 : vector<8x32xf32>
    %357 = vector.extract_strided_slice %354 {offsets = [0, 32], sizes = [8, 32], strides = [1, 1]} : vector<8x96xf32> to vector<8x32xf32>
    %358 = arith.mulf %357, %310 : vector<8x32xf32>
    %359 = vector.extract_strided_slice %354 {offsets = [0, 0], sizes = [8, 32], strides = [1, 1]} : vector<8x96xf32> to vector<8x32xf32>
    %360 = arith.mulf %359, %356 : vector<8x32xf32>
    %361 = arith.addf %358, %360 : vector<8x32xf32>
    %362 = vector.extract_strided_slice %354 {offsets = [0, 64], sizes = [8, 32], strides = [1, 1]} : vector<8x96xf32> to vector<8x32xf32>
    %363 = math.tanh %361 : vector<8x32xf32>
    %364 = arith.mulf %362, %363 : vector<8x32xf32>
    %365 = arith.index_cast %320 : i32 to index
    %c0_78 = arith.constant 0 : index
    %366 = vector.load %arg10[%365, %c0_78] : memref<64x32xf32, #tpu.memory_space<vmem>>, vector<8x32xf32>
    tpu.vector_store %arg10[%365, %c0_78], %344 {strides = array<i32>} : memref<64x32xf32, #tpu.memory_space<vmem>>, vector<8x32xf32>,
    %367 = arith.index_cast %322 : i32 to index
    %c0_79 = arith.constant 0 : index
    %368 = vector.load %arg11[%367, %c0_79] : memref<64x32xf32, #tpu.memory_space<vmem>>, vector<8x32xf32>
    tpu.vector_store %arg11[%367, %c0_79], %364 {strides = array<i32>} : memref<64x32xf32, #tpu.memory_space<vmem>>, vector<8x32xf32>,
    %c7_i32_80 = arith.constant 7 : i32
    %c7_i32_81 = arith.constant 7 : i32
    %369 = arith.subi %c7_i32_81, %c7_i32_80 : i32
    %c8_i32_82 = arith.constant 8 : i32
    %370 = arith.muli %c7_i32_80, %c8_i32_82 : i32
    %371 = tpu.assume_multiple %370, 8 : i32
    %c8_i32_83 = arith.constant 8 : i32
    %372 = arith.muli %369, %c8_i32_83 : i32
    %373 = tpu.assume_multiple %372, 8 : i32
    %374 = tpu.concatenate %344, %364 in 1 : vector<8x32xf32>, vector<8x32xf32> -> vector<8x64xf32>
    %cst_84 = arith.constant dense<0.000000e+00> : vector<8x256xf32>
    %375 = tpu.matmul %374, %10, %cst_84 {dimension_numbers = #tpu.dot_dimension_numbers<[1], [0], [0], [1], [0, 0, 1, 1], [], []>} : vector<8x64xf32>, vector<64x256xf32>, vector<8x256xf32> -> vector<8x256xf32>
    %376 = arith.index_cast %371 : i32 to index
    %c0_85 = arith.constant 0 : index
    %377 = vector.load %arg8[%376, %c0_85] : memref<64x128xf32, #tpu.memory_space<vmem>>, vector<8x128xf32>
    %378 = vector.extract_strided_slice %375 {offsets = [0, 0], sizes = [8, 128], strides = [1, 1]} : vector<8x256xf32> to vector<8x128xf32>
    %379 = arith.addf %377, %378 : vector<8x128xf32>
    %380 = vector.extract_strided_slice %379 {offsets = [0, 0], sizes = [8, 96], strides = [1, 1]} : vector<8x128xf32> to vector<8x96xf32>
    %381 = arith.negf %380 : vector<8x96xf32>
    %382 = math.exp %381 : vector<8x96xf32>
    %cst_86 = arith.constant 1.000000e+00 : f32
    %383 = vector.broadcast %cst_86 : f32 to vector<8x96xf32>
    %384 = arith.addf %383, %382 : vector<8x96xf32>
    %385 = arith.divf %383, %384 : vector<8x96xf32>
    %386 = vector.extract_strided_slice %379 {offsets = [0, 96], sizes = [8, 32], strides = [1, 1]} : vector<8x128xf32> to vector<8x32xf32>
    %387 = math.tanh %386 : vector<8x32xf32>
    %388 = vector.extract_strided_slice %385 {offsets = [0, 32], sizes = [8, 32], strides = [1, 1]} : vector<8x96xf32> to vector<8x32xf32>
    %389 = arith.mulf %388, %341 : vector<8x32xf32>
    %390 = vector.extract_strided_slice %385 {offsets = [0, 0], sizes = [8, 32], strides = [1, 1]} : vector<8x96xf32> to vector<8x32xf32>
    %391 = arith.mulf %390, %387 : vector<8x32xf32>
    %392 = arith.addf %389, %391 : vector<8x32xf32>
    %393 = vector.extract_strided_slice %385 {offsets = [0, 64], sizes = [8, 32], strides = [1, 1]} : vector<8x96xf32> to vector<8x32xf32>
    %394 = math.tanh %392 : vector<8x32xf32>
    %395 = arith.mulf %393, %394 : vector<8x32xf32>
    %396 = arith.index_cast %373 : i32 to index
    %c0_87 = arith.constant 0 : index
    %397 = vector.load %arg9[%396, %c0_87] : memref<64x128xf32, #tpu.memory_space<vmem>>, vector<8x128xf32>
    %398 = vector.extract_strided_slice %375 {offsets = [0, 128], sizes = [8, 128], strides = [1, 1]} : vector<8x256xf32> to vector<8x128xf32>
    %399 = arith.addf %397, %398 : vector<8x128xf32>
    %400 = vector.extract_strided_slice %399 {offsets = [0, 0], sizes = [8, 96], strides = [1, 1]} : vector<8x128xf32> to vector<8x96xf32>
    %401 = arith.negf %400 : vector<8x96xf32>
    %402 = math.exp %401 : vector<8x96xf32>
    %cst_88 = arith.constant 1.000000e+00 : f32
    %403 = vector.broadcast %cst_88 : f32 to vector<8x96xf32>
    %404 = arith.addf %403, %402 : vector<8x96xf32>
    %405 = arith.divf %403, %404 : vector<8x96xf32>
    %406 = vector.extract_strided_slice %399 {offsets = [0, 96], sizes = [8, 32], strides = [1, 1]} : vector<8x128xf32> to vector<8x32xf32>
    %407 = math.tanh %406 : vector<8x32xf32>
    %408 = vector.extract_strided_slice %405 {offsets = [0, 32], sizes = [8, 32], strides = [1, 1]} : vector<8x96xf32> to vector<8x32xf32>
    %409 = arith.mulf %408, %361 : vector<8x32xf32>
    %410 = vector.extract_strided_slice %405 {offsets = [0, 0], sizes = [8, 32], strides = [1, 1]} : vector<8x96xf32> to vector<8x32xf32>
    %411 = arith.mulf %410, %407 : vector<8x32xf32>
    %412 = arith.addf %409, %411 : vector<8x32xf32>
    %413 = vector.extract_strided_slice %405 {offsets = [0, 64], sizes = [8, 32], strides = [1, 1]} : vector<8x96xf32> to vector<8x32xf32>
    %414 = math.tanh %412 : vector<8x32xf32>
    %415 = arith.mulf %413, %414 : vector<8x32xf32>
    %416 = arith.index_cast %371 : i32 to index
    %c0_89 = arith.constant 0 : index
    %417 = vector.load %arg10[%416, %c0_89] : memref<64x32xf32, #tpu.memory_space<vmem>>, vector<8x32xf32>
    tpu.vector_store %arg10[%416, %c0_89], %395 {strides = array<i32>} : memref<64x32xf32, #tpu.memory_space<vmem>>, vector<8x32xf32>,
    %418 = arith.index_cast %373 : i32 to index
    %c0_90 = arith.constant 0 : index
    %419 = vector.load %arg11[%418, %c0_90] : memref<64x32xf32, #tpu.memory_space<vmem>>, vector<8x32xf32>
    tpu.vector_store %arg11[%418, %c0_90], %415 {strides = array<i32>} : memref<64x32xf32, #tpu.memory_space<vmem>>, vector<8x32xf32>,
    %c8_i32_91 = arith.constant 8 : i32
    %c0_92 = arith.constant 0 : index
    %c0_93 = arith.constant 0 : index
    %420 = vector.load %arg10[%c0_92, %c0_93] : memref<64x32xf32, #tpu.memory_space<vmem>>, vector<64x32xf32>
    %c0_94 = arith.constant 0 : index
    %c0_95 = arith.constant 0 : index
    %421 = vector.load %arg4[%c0_94, %c0_95] : memref<32x128xf32, #tpu.memory_space<vmem>>, vector<32x128xf32>
    %cst_96 = arith.constant dense<0.000000e+00> : vector<64x128xf32>
    %422 = tpu.matmul %420, %421, %cst_96 {dimension_numbers = #tpu.dot_dimension_numbers<[1], [0], [0], [1], [0, 0, 1, 1], [], []>} : vector<64x32xf32>, vector<32x128xf32>, vector<64x128xf32> -> vector<64x128xf32>
    %c0_97 = arith.constant 0 : index
    %c0_98 = arith.constant 0 : index
    %423 = vector.load %arg11[%c0_97, %c0_98] : memref<64x32xf32, #tpu.memory_space<vmem>>, vector<64x32xf32>
    %c0_99 = arith.constant 0 : index
    %c0_100 = arith.constant 0 : index
    %424 = vector.load %arg5[%c0_99, %c0_100] : memref<32x128xf32, #tpu.memory_space<vmem>>, vector<32x128xf32>
    %cst_101 = arith.constant dense<0.000000e+00> : vector<64x128xf32>
    %425 = tpu.matmul %423, %424, %cst_101 {dimension_numbers = #tpu.dot_dimension_numbers<[1], [0], [0], [1], [0, 0, 1, 1], [], []>} : vector<64x32xf32>, vector<32x128xf32>, vector<64x128xf32> -> vector<64x128xf32>
    %426 = arith.addf %422, %425 : vector<64x128xf32>
    %c0_102 = arith.constant 0 : index
    %c0_103 = arith.constant 0 : index
    %427 = vector.load %arg6[%c0_102, %c0_103] : memref<1x128xf32, #tpu.memory_space<vmem>>, vector<1x128xf32>
    %428 = vector.broadcast %427 : vector<1x128xf32> to vector<64x128xf32>
    %429 = arith.addf %426, %428 : vector<64x128xf32>
    %c0_104 = arith.constant 0 : index
    %c0_105 = arith.constant 0 : index
    %430 = vector.load %arg7[%c0_104, %c0_105] : memref<64x128xf32, #tpu.memory_space<vmem>>, vector<64x128xf32>
    tpu.vector_store %arg7[%c0_104, %c0_105], %429 {strides = array<i32>} : memref<64x128xf32, #tpu.memory_space<vmem>>, vector<64x128xf32>,
    return
  }
}

</mosaic_0001>

<bundles_post_ra>
// kernel: bilstm_forward.1
= control target key start
LH: loop header
LB: loop body
LE: loop exit
PB: predicated region body
PF: predicated region fallthrough
CT: control target
= control target key end

     0   :  { %v2086_v3 = vmov 0.0   ;;  %vm54_vm0 = vcmask 261120   ;;  %v44_v42 = vlaneseq  ;;  %s2088_s14 = smov 64   ;;  %s2089_s15 = smov 96   ;;  %vm224_vm1 = vcmask 523264   ;;  %s2598_s1 = inlined_call_operand.vmem [shape: f32[32,256], index: 1, kind: input, shape index: {}]   ;;  %s2599_s2 = inlined_call_operand.vmem [shape: f32[64,256], index: 2, kind: input, shape index: {}]   ;;  %s2600_s0 = inlined_call_operand.vmem [shape: f32[64,32], index: 0, kind: input, shape index: {}]   ;;  %s2601_s3 = inlined_call_operand.vmem [shape: f32[1,256], index: 3, kind: input, shape index: {}]   ;;  %s2602_s5 = inlined_call_operand.vmem [shape: f32[32,128], index: 5, kind: input, shape index: {}]   ;;  %s2603_s4 = inlined_call_operand.vmem [shape: f32[32,128], index: 4, kind: input, shape index: {}]   ;;  %s2604_s6 = inlined_call_operand.vmem [shape: f32[1,128], index: 6, kind: input, shape index: {}]   ;;  %s2605_s7 = inlined_call_operand.vmem [shape: f32[64,128], index: 7, kind: output, shape index: {}]  }
   0x1   :  { %v35_v0 = vld [vmem:[%s2598_s1 + $0x8] sm:$0xff]  ;;  %v37_v1 = vld [vmem:[%s2598_s1 + $0x18] sm:$0xff]  ;;  %v34_v2 = vld [vmem:[%s2598_s1] sm:$0xff]  ;;  %167 = vmatprep.mubr.f32.mxu1 %v2086_v3  ;;  %143 = vmatprep.mubr.f32.mxu0 %v2086_v3 }
   0x2   :  { %v1790_v4 = vpack.c.bf16 %v37_v1, %v35_v0  ;;  %v36_v5 = vld [vmem:[%s2598_s1 + $0x10] sm:$0xff]  ;;  %v39_v6 = vld [vmem:[%s2598_s1 + $0x28] sm:$0xff]  ;;  %v41_v7 = vld [vmem:[%s2598_s1 + $0x38] sm:$0xff]  ;;  %v45_v47 = vshrl.u32 %v44_v42, 7 }
   0x3   :  { %v1792_v8 = vpack.c.bf16 %v36_v5, %v34_v2  ;;  %v1794_v9 = vpack.c.bf16 %v41_v7, %v39_v6  ;;  %v38_v10 = vld [vmem:[%s2598_s1 + $0x20] sm:$0xff]  ;;  %v40_v11 = vld [vmem:[%s2598_s1 + $0x30] sm:$0xff]  ;;  %v209_v12 = vld [vmem:[%s2599_s2 + $0x8] sm:$0xff] }
   0x4   :  { %1942 = vmatprep.subr.bf16.mxu1 %v1790_v4  ;;  %v211_v13 = vld [vmem:[%s2599_s2 + $0x18] sm:$0xff]  ;;  %1791 = vmatprep.subr.bf16.mxu0 %v1790_v4  ;;  %v1796_v14 = vpack.c.bf16 %v40_v11, %v38_v10  ;;  %v208_v16 = vld [vmem:[%s2599_s2] sm:$0xff]  ;;  %v210_v17 = vld [vmem:[%s2599_s2 + $0x10] sm:$0xff]  ;;  %v46_v50 = vsub.s32 0, %v45_v47  ;;  %v50_v54 = vsub.s32 1, %v45_v47 }
   0x5   :  { %1944 = vmatpush1.bf16.msra.mxu1 %v1792_v8  ;;  %1793 = vmatpush1.bf16.msra.mxu0 %v1792_v8  ;;  %v2162_v15 = vpack.c.bf16 %v211_v13, %v209_v12  ;;  %v213_v18 = vld [vmem:[%s2599_s2 + $0x28] sm:$0xff]  ;;  %v215_v19 = vld [vmem:[%s2599_s2 + $0x38] sm:$0xff]  ;;  %v30_v20 = vld [vmem:[%s2600_s0 + $0x20] sm:$0xff]  ;;  %v2179_v21 = vpack.c.bf16 %v210_v17, %v208_v16 }
   0x6   :  { %1943 = vmatprep.subr.bf16.mxu1 %v1794_v9  ;;  %1795 = vmatprep.subr.bf16.mxu0 %v1794_v9  ;;  %v2182_v22 = vpack.c.bf16 %v215_v19, %v213_v18  ;;  %v212_v23 = vld [vmem:[%s2599_s2 + $0x20] sm:$0xff]  ;;  %v214_v24 = vld [vmem:[%s2599_s2 + $0x30] sm:$0xff]  ;;  %v217_v26 = vld [vmem:[%s2599_s2 + $0x48] sm:$0xff] }
   0x7   :  { %v26_v25 = vld [vmem:[%s2600_s0] sm:$0xff]  ;;  %v219_v27 = vld [vmem:[%s2599_s2 + $0x58] sm:$0xff]  ;;  %v31_v28 = vld [vmem:[%s2600_s0 + $0x28] sm:$0xff]  ;;  %v2207_v29 = vpack.c.bf16 %v214_v24, %v212_v23 }
   0x8   :  { %v2210_v30 = vpack.c.bf16 %v219_v27, %v217_v26  ;;  %v216_v31 = vld [vmem:[%s2599_s2 + $0x40] sm:$0xff]  ;;  %v218_v32 = vld [vmem:[%s2599_s2 + $0x50] sm:$0xff]  ;;  %v221_v33 = vld [vmem:[%s2599_s2 + $0x68] sm:$0xff] }
   0x9   :  { %1945 = vmatpush1.bf16.msra.mxu1 %v1796_v14  ;;  %1797 = vmatpush1.bf16.msra.mxu0 %v1796_v14  ;;  %v223_v34 = vld [vmem:[%s2599_s2 + $0x78] sm:$0xff]  ;;  %v32_v35 = vld [vmem:[%s2600_s0 + $0x30] sm:$0xff]  ;;  %v2233_v36 = vpack.c.bf16 %v218_v32, %v216_v31  ;;  %v220_v38 = vld [vmem:[%s2599_s2 + $0x60] sm:$0xff] }
   0xa   :  { %1799 = vmatprep.subr.bf16.mxu1 %v2162_v15  ;;  %1831 = vmatprep.subr.bf16.mxu0 %v2162_v15  ;;  %v2236_v37 = vpack.c.bf16 %v223_v34, %v221_v33  ;;  %v222_v39 = vld [vmem:[%s2599_s2 + $0x70] sm:$0xff]  ;;  %v33_v40 = vld [vmem:[%s2600_s0 + $0x38] sm:$0xff]  ;;  %v42_v51 = vld [vmem:[%s2601_s3] sm:$0x3]  ;;  %s2087_s3 = smov 32  }
   0xb   :  { %v2252_v41 = vpack.c.bf16 %v222_v39, %v220_v38  ;;  %v2290_v55 = vrot.slane %v42_v51, %v46_v50  ;;  %v2295_v59 = vrot.slane %v42_v51, %v50_v54  ;;  %v27_v27 = vld [vmem:[%s2600_s0 + $0x8] sm:$0xff] }
   0xc   :  { %1682 = vmatmul.mubr.msk.f32.vlgmr.msra.gmra.mrb[0].mxu1 %vm54_vm0, %v30_v20  ;;  %1678 = vmatmul.mubr.msk.f32.vlgmr.msra.gmra.mrb[0].mxu0 %vm54_vm0, %v26_v25 }
   0xd   :  { %1801 = vmatpush1.bf16.msra.mxu1 %v2179_v21  ;;  %173 = vmatprep.mubr.f32.mxu1 %v2086_v3 }
   0xe   :  { %1803 = vmatprep.subr.bf16.mxu1 %v2182_v22  ;;  %149 = vmatprep.mubr.f32.mxu0 %v2086_v3 }
   0xf   :  { %1833 = vmatpush1.bf16.msra.mxu0 %v2179_v21 }
  0x10   :  { %1683 = vmatmul.mubr.msk.f32.gmra.mrb[2].mxu1 %vm54_vm0, %v31_v28  ;;  %1835 = vmatprep.subr.bf16.mxu0 %v2182_v22 }
  0x11   :  { %1805 = vmatpush1.bf16.msra.mxu1 %v2207_v29  ;;  %179 = vmatprep.mubr.f32.mxu1 %v2086_v3 }
  0x12   :  { %1807 = vmatprep.subr.bf16.mxu1 %v2210_v30  ;;  %1679 = vmatmul.mubr.msk.f32.gmra.mrb[2].mxu0 %vm54_vm0, %v27_v27 }
  0x13   :  { %1837 = vmatpush1.bf16.msra.mxu0 %v2207_v29  ;;  %155 = vmatprep.mubr.f32.mxu0 %v2086_v3 }
  0x14   :  { %1684 = vmatmul.mubr.msk.f32.gmra.mrb[4].mxu1 %vm54_vm0, %v32_v35  ;;  %1839 = vmatprep.subr.bf16.mxu0 %v2210_v30 }
  0x15   :  { %1809 = vmatpush1.bf16.msra.mxu1 %v2233_v36  ;;  %185 = vmatprep.mubr.f32.mxu1 %v2086_v3 }
  0x16   :  { %1811 = vmatprep.subr.bf16.mxu1 %v2236_v37 }
  0x17   :  { %1841 = vmatpush1.bf16.msra.mxu0 %v2233_v36 }
  0x18   :  { %1685 = vmatmul.mubr.msk.f32.gmra.mrb[6].mxu1 %vm54_vm0, %v33_v40  ;;  %1843 = vmatprep.subr.bf16.mxu0 %v2236_v37 }
  0x19   :  { %1813 = vmatpush1.bf16.msra.mxu1 %v2252_v41  ;;  %292 = vmatprep.mubr.f32.mxu1 %v2086_v3 }
  0x1a   :  { %1815 = vmatprep.subr.bf16.mxu1 %v2162_v15 }
  0x1b   :  { %1845 = vmatpush1.bf16.msra.mxu0 %v2252_v41 }
  0x1c   :  { %293 = vmatmul.mubr.f32.vlgmr.msra.gmra.mrb[8].mxu1 %v2086_v3  ;;  %1863 = vmatprep.subr.bf16.mxu0 %v2162_v15 }
  0x1d   :  { %1817 = vmatpush1.bf16.msra.mxu1 %v2179_v21  ;;  %434 = vmatprep.mubr.f32.mxu1 %v2086_v3 }
  0x1e   :  { %1819 = vmatprep.subr.bf16.mxu1 %v2182_v22 }
  0x21   :  { %1821 = vmatpush1.bf16.msra.mxu1 %v2207_v29 }
  0x22   :  { %1823 = vmatprep.subr.bf16.mxu1 %v2210_v30 }
  0x25   :  { %1825 = vmatpush1.bf16.msra.mxu1 %v2233_v36 }
  0x26   :  { %1827 = vmatprep.subr.bf16.mxu1 %v2236_v37 }
  0x29   :  { %1829 = vmatpush1.bf16.msra.mxu1 %v2252_v41 }
  0x2a   :  { %1847 = vmatprep.subr.bf16.mxu1 %v2162_v15 }
  0xdf   :  { %v2273_v43 = vpop.f32.mrb[0].mxu1  ;;  %v145_v44 = vpop.f32.mrb[0].mxu0 }
  0xe0   :  { %v2275_v45 = vpop.f32.mrb[1].mxu1  ;;  %v2277_v46 = vpop.f32.mrb[1].mxu0  ;;  %v146_v58 = vadd.f32 %v145_v44, %v2290_v55 }
  0xe3   :  { %v2279_v48 = vpop.f32.mrb[2].mxu1 }
  0xe4   :  { %v2281_v49 = vpop.f32.mrb[3].mxu1 }
  0xe5   :  { %v151_v39 = vpop.f32.mrb[2].mxu0 }
  0xe6   :  { %v2332_v40 = vpop.f32.mrb[3].mxu0  ;;  %v152_v42 = vadd.f32 %v151_v39, %v2290_v55 }
  0xe7   :  { %v2286_v52 = vpop.f32.mrb[4].mxu1 }
  0xe8   :  { %v2288_v53 = vpop.f32.mrb[5].mxu1 }
  0xe9   :  { %v184_v44 = vadd.f32 %v2288_v53, %v2295_v59 }
  0xeb   :  { %v2292_v56 = vpop.f32.mrb[6].mxu1 }
  0xec   :  { %v189_v57 = vpop.f32.mrb[7].mxu1 }
  0xed   :  { %v190_v60 = vadd.f32 %v189_v57, %v2295_v59 }
  0xef   :  { %v294_v61 = vpop.f32.mrb[8].mxu1 }
  0xf0   :  { %v300_v62 = vadd.f32 %v294_v61, %v146_v58  ;;  %v296_v63 = vpop.f32.mrb[9].mxu1 }
  0xf1   :  { %v327_v0 = vadd.f32 %v296_v63, %v190_v60 }
  0xf2   :  { %1958 = vtanh.f32 %v300_v62  ;;  %v1686_v4 = vmul.f32 -1.442695, %v300_v62 }
  0xf3   :  { %1960 = vtanh.f32 %v327_v0  ;;  %v1687_v5 = vmul.f32 -1.442695, %v327_v0 }
  0xf4   :  { %1962 = vpow2.f32 %v1686_v4 }
  0xf5   :  { %1964 = vpow2.f32 %v1687_v5 }
  0xfc   :  { %v1959_v1 = vpop.eup %1958 }
  0xfd   :  { %310 = vrot.lane.b32.xlu0 %v1959_v1, %s2087_s3  ;;  %v1961_v2 = vpop.eup %1960 }
  0xfe   :  { %v1963_v6 = vpop.eup %1962 }
  0xff   :  { %v304_v7 = vadd.f32 1.0, %v1963_v6  ;;  %v1965_v8 = vpop.eup %1964 }
 0x100   :  { %v331_v9 = vadd.f32 1.0, %v1965_v8 }
 0x101   :  { %337 = vrot.lane.b32.xlu0 %v1961_v2, %s2087_s3  ;;  %1966 = vrcp.f32 %v304_v7 }
 0x102   :  { %1968 = vrcp.f32 %v331_v9 }
 0x10b   :  { %v1967_v10 = vpop.eup %1966 }
 0x10c   :  { %v1969_v13 = vpop.eup %1968  ;;  %v308_v17 = vmul.f32 0.0, %v1967_v10 }
 0x10d   :  { %v335_v20 = vmul.f32 0.0, %v1969_v13 }
 0x16f   :  { %v311_v11 = vpop.permute.xlu0 %310 }
 0x170   :  { %v313_v12 = vmul.f32 %v1967_v10, %v311_v11 }
 0x172   :  { %315 = vrot.lane.b32.xlu1 %v313_v12, %s2087_s3 }
 0x173   :  { %v338_v14 = vpop.permute.xlu0 %337 }
 0x174   :  { %v340_v16 = vmul.f32 %v1969_v13, %v338_v14  ;;  %v28_v14 = vld [vmem:[%s2600_s0 + $0x10] sm:$0xff] }
 0x175   :  { %1680 = vmatmul.mubr.msk.f32.gmra.mrb[4].mxu0 %vm54_vm0, %v28_v14 }
 0x176   :  { %342 = vrot.lane.b32.xlu1 %v340_v16, %s2087_s3  ;;  %161 = vmatprep.mubr.f32.mxu0 %v2086_v3  ;;  %v29_v16 = vld [vmem:[%s2600_s0 + $0x18] sm:$0xff] }
 0x179   :  { %1681 = vmatmul.mubr.msk.f32.gmra.mrb[6].mxu0 %vm54_vm0, %v29_v16 }
 0x17a   :  { %578 = vmatprep.mubr.f32.mxu0 %v2086_v3 }
 0x1e4   :  { %v316_v18 = vpop.permute.xlu1 %315 }
 0x1e5   :  { %v2302_v19 = vadd.f32 %v316_v18, %v308_v17 }
 0x1e7   :  { %1970 = vtanh.f32 %v2302_v19 }
 0x1e8   :  { %v343_v23 = vpop.permute.xlu1 %342 }
 0x1e9   :  { %v2305_v24 = vadd.f32 %v343_v23, %v335_v20 }
 0x1eb   :  { %1972 = vtanh.f32 %v2305_v24 }
 0x1f1   :  { %v1971_v25 = vpop.eup %1970 }
 0x1f2   :  { %321 = vrot.lane.b32.xlu0 %v1971_v25, %s2087_s3 }
 0x1f5   :  { %v1973_v26 = vpop.eup %1972 }
 0x1f6   :  { %348 = vrot.lane.b32.xlu1 %v1973_v26, %s2087_s3 }
 0x248   :  { %v157_v25 = vpop.f32.mrb[4].mxu0 }
 0x249   :  { %v2366_v26 = vpop.f32.mrb[5].mxu0 }
 0x24c   :  { %v2368_v27 = vpop.f32.mrb[6].mxu0 }
 0x264   :  { %v322_v28 = vpop.permute.xlu0 %321 }
 0x265   :  { %v324_v31 = vmul.f32 %v1967_v10, %v322_v28  ;;  %v2370_v28 = vpop.f32.mrb[7].mxu0 }
 0x267   :  { %353 = vrot.lane.b32.xlu0 %v324_v31, %s2088_s14 }
 0x268   :  { %v349_v32 = vpop.permute.xlu1 %348 }
 0x269   :  { %v2316_v33 = vmul.f32 %v1969_v13, %v349_v32 }
 0x26b   :  { %363 = vrot.lane.b32.xlu1 %v2316_v33, %s2089_s15 }
 0x2d9   :  { %v354_v34 = vpop.permute.xlu0 %353 }
 0x2da   :  { %356 = vst.msk [vmem:[#allocation4] sm:$0xff] %vm54_vm0, %v354_v34 }
 0x2dd   :  { %v364_v35 = vpop.permute.xlu1 %363 }
 0x2de   :  { %v366_v38 = vsel %vm54_vm0, %v354_v34, %v364_v35  ;;  %v158_v35 = vadd.f32 %v157_v25, %v2290_v55 }
 0x2df   :  { %1688 = vmatmul.mubr.msk.f32.vlgmr.msra.gmra.mrb[10].mxu1 %vm224_vm1, %v366_v38  ;;  %v178_v38 = vadd.f32 %v2281_v49, %v2295_v59 }
 0x2e0   :  { %1849 = vmatpush1.bf16.msra.mxu1 %v2179_v21  ;;  %722 = vmatprep.mubr.f32.mxu1 %v2086_v3 }
 0x2e1   :  { %1851 = vmatprep.subr.bf16.mxu1 %v2182_v22 }
 0x2e4   :  { %1853 = vmatpush1.bf16.msra.mxu1 %v2207_v29 }
 0x2e5   :  { %1855 = vmatprep.subr.bf16.mxu1 %v2210_v30 }
 0x2e8   :  { %1857 = vmatpush1.bf16.msra.mxu1 %v2233_v36 }
 0x2e9   :  { %1859 = vmatprep.subr.bf16.mxu1 %v2236_v37 }
 0x2ec   :  { %1861 = vmatpush1.bf16.msra.mxu1 %v2252_v41 }
 0x2ed   :  { %1879 = vmatprep.subr.bf16.mxu1 %v2162_v15 }
 0x3b2   :  { %v436_v47 = vpop.f32.mrb[10].mxu1 }
 0x3b3   :  { %v443_v50 = vadd.f32 %v436_v47, %v152_v42  ;;  %v438_v51 = vpop.f32.mrb[11].mxu1 }
 0x3b4   :  { %v470_v54 = vadd.f32 %v438_v51, %v184_v44 }
 0x3b5   :  { %1974 = vtanh.f32 %v443_v50  ;;  %v1689_v60 = vmul.f32 -1.442695, %v443_v50 }
 0x3b6   :  { %1976 = vtanh.f32 %v470_v54  ;;  %v1690_v61 = vmul.f32 -1.442695, %v470_v54 }
 0x3b7   :  { %1978 = vpow2.f32 %v1689_v60 }
 0x3b8   :  { %1980 = vpow2.f32 %v1690_v61 }
 0x3bf   :  { %v1975_v57 = vpop.eup %1974 }
 0x3c0   :  { %v1977_v58 = vpop.eup %1976  ;;  %453 = vrot.lane.b32.xlu0 %v1975_v57, %s2087_s3 }
 0x3c1   :  { %480 = vrot.lane.b32.xlu1 %v1977_v58, %s2087_s3  ;;  %v1979_v62 = vpop.eup %1978 }
 0x3c2   :  { %v1981_v63 = vpop.eup %1980  ;;  %v447_v0 = vadd.f32 1.0, %v1979_v62 }
 0x3c3   :  { %v474_v53 = vadd.f32 1.0, %v1981_v63 }
 0x3c4   :  { %1982 = vrcp.f32 %v447_v0 }
 0x3c5   :  { %1984 = vrcp.f32 %v474_v53 }
 0x3ce   :  { %v1983_v1 = vpop.eup %1982 }
 0x3cf   :  { %v1985_v4 = vpop.eup %1984  ;;  %v451_v8 = vmul.f32 %v1983_v1, %v2302_v19 }
 0x3d0   :  { %v478_v10 = vmul.f32 %v1985_v4, %v2305_v24 }
 0x432   :  { %v454_v2 = vpop.permute.xlu0 %453 }
 0x433   :  { %v456_v5 = vmul.f32 %v1983_v1, %v454_v2  ;;  %v481_v6 = vpop.permute.xlu1 %480 }
 0x434   :  { %v483_v7 = vmul.f32 %v1985_v4, %v481_v6 }
 0x435   :  { %458 = vrot.lane.b32.xlu0 %v456_v5, %s2087_s3 }
 0x436   :  { %485 = vrot.lane.b32.xlu1 %v483_v7, %s2087_s3 }
 0x4a7   :  { %v459_v9 = vpop.permute.xlu0 %458 }
 0x4a8   :  { %v2343_v11 = vadd.f32 %v459_v9, %v451_v8  ;;  %v486_v12 = vpop.permute.xlu1 %485 }
 0x4a9   :  { %v2345_v13 = vadd.f32 %v486_v12, %v478_v10 }
 0x4aa   :  { %1986 = vtanh.f32 %v2343_v11 }
 0x4ab   :  { %1988 = vtanh.f32 %v2345_v13 }
 0x4b4   :  { %v1987_v17 = vpop.eup %1986 }
 0x4b5   :  { %v1989_v18 = vpop.eup %1988  ;;  %464 = vrot.lane.b32.xlu0 %v1987_v17, %s2087_s3 }
 0x4b6   :  { %491 = vrot.lane.b32.xlu1 %v1989_v18, %s2087_s3 }
 0x527   :  { %v465_v19 = vpop.permute.xlu0 %464 }
 0x528   :  { %v467_v20 = vmul.f32 %v1983_v1, %v465_v19  ;;  %v492_v23 = vpop.permute.xlu1 %491 }
 0x529   :  { %v2361_v24 = vmul.f32 %v1985_v4, %v492_v23  ;;  %v172_v23 = vadd.f32 %v2275_v45, %v2295_v59 }
 0x52a   :  { %496 = vrot.lane.b32.xlu0 %v467_v20, %s2088_s14  ;;  %v164_v20 = vadd.f32 %v2368_v27, %v2290_v55 }
 0x52b   :  { %507 = vrot.lane.b32.xlu1 %v2361_v24, %s2089_s15 }
 0x59c   :  { %v497_v31 = vpop.permute.xlu0 %496 }
 0x59d   :  { %500 = vst.msk [vmem:[#allocation4 + $0x8] sm:$0xff] %vm54_vm0, %v497_v31  ;;  %v508_v32 = vpop.permute.xlu1 %507 }
 0x59e   :  { %v510_v34 = vsel %vm54_vm0, %v497_v31, %v508_v32 }
 0x59f   :  { %1691 = vmatmul.mubr.msk.f32.vlgmr.msra.gmra.mrb[8].mxu0 %vm224_vm1, %v510_v34 }
 0x5a0   :  { %1865 = vmatpush1.bf16.msra.mxu0 %v2179_v21  ;;  %866 = vmatprep.mubr.f32.mxu0 %v2086_v3 }
 0x5a1   :  { %1867 = vmatprep.subr.bf16.mxu0 %v2182_v22 }
 0x5a4   :  { %1869 = vmatpush1.bf16.msra.mxu0 %v2207_v29 }
 0x5a5   :  { %1871 = vmatprep.subr.bf16.mxu0 %v2210_v30 }
 0x5a8   :  { %1873 = vmatpush1.bf16.msra.mxu0 %v2233_v36 }
 0x5a9   :  { %1875 = vmatprep.subr.bf16.mxu0 %v2236_v37 }
 0x5ac   :  { %1877 = vmatpush1.bf16.msra.mxu0 %v2252_v41 }
 0x5ad   :  { %1895 = vmatprep.subr.bf16.mxu0 %v2162_v15 }
 0x672   :  { %v580_v39 = vpop.f32.mrb[8].mxu0 }
 0x673   :  { %v587_v42 = vadd.f32 %v580_v39, %v158_v35  ;;  %v582_v44 = vpop.f32.mrb[9].mxu0 }
 0x674   :  { %v614_v47 = vadd.f32 %v582_v44, %v178_v38 }
 0x675   :  { %1990 = vtanh.f32 %v587_v42  ;;  %v1692_v54 = vmul.f32 -1.442695, %v587_v42 }
 0x676   :  { %1992 = vtanh.f32 %v614_v47  ;;  %v1693_v57 = vmul.f32 -1.442695, %v614_v47 }
 0x677   :  { %1994 = vpow2.f32 %v1692_v54 }
 0x678   :  { %1996 = vpow2.f32 %v1693_v57 }
 0x67f   :  { %v1991_v50 = vpop.eup %1990 }
 0x680   :  { %v1993_v51 = vpop.eup %1992  ;;  %597 = vrot.lane.b32.xlu0 %v1991_v50, %s2087_s3 }
 0x681   :  { %624 = vrot.lane.b32.xlu1 %v1993_v51, %s2087_s3  ;;  %v1995_v58 = vpop.eup %1994 }
 0x682   :  { %v1997_v60 = vpop.eup %1996  ;;  %v591_v61 = vadd.f32 1.0, %v1995_v58 }
 0x683   :  { %v618_v49 = vadd.f32 1.0, %v1997_v60 }
 0x684   :  { %1998 = vrcp.f32 %v591_v61 }
 0x685   :  { %2000 = vrcp.f32 %v618_v49 }
 0x68e   :  { %v1999_v62 = vpop.eup %1998 }
 0x68f   :  { %v2001_v0 = vpop.eup %2000  ;;  %v595_v4 = vmul.f32 %v1999_v62, %v2343_v11 }
 0x690   :  { %v622_v6 = vmul.f32 %v2001_v0, %v2345_v13 }
 0x6f2   :  { %v598_v63 = vpop.permute.xlu0 %597 }
 0x6f3   :  { %v600_v53 = vmul.f32 %v1999_v62, %v598_v63  ;;  %v625_v1 = vpop.permute.xlu1 %624 }
 0x6f4   :  { %v627_v2 = vmul.f32 %v2001_v0, %v625_v1 }
 0x6f5   :  { %602 = vrot.lane.b32.xlu0 %v600_v53, %s2087_s3 }
 0x6f6   :  { %629 = vrot.lane.b32.xlu1 %v627_v2, %s2087_s3 }
 0x767   :  { %v603_v5 = vpop.permute.xlu0 %602 }
 0x768   :  { %v605_v7 = vadd.f32 %v603_v5, %v595_v4  ;;  %v630_v8 = vpop.permute.xlu1 %629 }
 0x769   :  { %v632_v9 = vadd.f32 %v630_v8, %v622_v6 }
 0x76a   :  { %2002 = vtanh.f32 %v605_v7 }
 0x76b   :  { %2004 = vtanh.f32 %v632_v9 }
 0x774   :  { %v2003_v10 = vpop.eup %2002 }
 0x775   :  { %v2005_v12 = vpop.eup %2004  ;;  %608 = vrot.lane.b32.xlu0 %v2003_v10, %s2087_s3  ;;  %v170_v10 = vadd.f32 %v2273_v43, %v2290_v55 }
 0x776   :  { %635 = vrot.lane.b32.xlu1 %v2005_v12, %s2087_s3  ;;  %v166_v12 = vadd.f32 %v2370_v28, %v2295_v59 }
 0x7e7   :  { %v609_v14 = vpop.permute.xlu0 %608 }
 0x7e8   :  { %v611_v16 = vmul.f32 %v1999_v62, %v609_v14  ;;  %v636_v17 = vpop.permute.xlu1 %635 }
 0x7e9   :  { %v2395_v18 = vmul.f32 %v2001_v0, %v636_v17 }
 0x7ea   :  { %640 = vrot.lane.b32.xlu0 %v611_v16, %s2088_s14 }
 0x7eb   :  { %651 = vrot.lane.b32.xlu1 %v2395_v18, %s2089_s15 }
 0x85c   :  { %v641_v11 = vpop.permute.xlu0 %640 }
 0x85d   :  { %644 = vst.msk [vmem:[#allocation4 + $0x10] sm:$0xff] %vm54_vm0, %v641_v11  ;;  %v652_v13 = vpop.permute.xlu1 %651 }
 0x85e   :  { %v654_v19 = vsel %vm54_vm0, %v641_v11, %v652_v13 }
 0x85f   :  { %1694 = vmatmul.mubr.msk.f32.vlgmr.msra.gmra.mrb[12].mxu1 %vm224_vm1, %v654_v19 }
 0x860   :  { %1881 = vmatpush1.bf16.msra.mxu1 %v2179_v21  ;;  %1010 = vmatprep.mubr.f32.mxu1 %v2086_v3 }
 0x861   :  { %1883 = vmatprep.subr.bf16.mxu1 %v2182_v22 }
 0x864   :  { %1885 = vmatpush1.bf16.msra.mxu1 %v2207_v29 }
 0x865   :  { %1887 = vmatprep.subr.bf16.mxu1 %v2210_v30 }
 0x868   :  { %1889 = vmatpush1.bf16.msra.mxu1 %v2233_v36 }
 0x869   :  { %1891 = vmatprep.subr.bf16.mxu1 %v2236_v37 }
 0x86c   :  { %1893 = vmatpush1.bf16.msra.mxu1 %v2252_v41 }
 0x86d   :  { %1911 = vmatprep.subr.bf16.mxu1 %v2162_v15 }
 0x932   :  { %v724_v25 = vpop.f32.mrb[12].mxu1 }
 0x933   :  { %v731_v31 = vadd.f32 %v724_v25, %v164_v20  ;;  %v726_v32 = vpop.f32.mrb[13].mxu1 }
 0x934   :  { %v758_v34 = vadd.f32 %v726_v32, %v172_v23 }
 0x935   :  { %2006 = vtanh.f32 %v731_v31  ;;  %v1695_v39 = vmul.f32 -1.442695, %v731_v31 }
 0x936   :  { %2008 = vtanh.f32 %v758_v34  ;;  %v1696_v15 = vmul.f32 -1.442695, %v758_v34 }
 0x937   :  { %2010 = vpow2.f32 %v1695_v39 }
 0x938   :  { %2012 = vpow2.f32 %v1696_v15 }
 0x93f   :  { %v2007_v35 = vpop.eup %2006 }
 0x940   :  { %v2009_v38 = vpop.eup %2008  ;;  %741 = vrot.lane.b32.xlu0 %v2007_v35, %s2087_s3 }
 0x941   :  { %768 = vrot.lane.b32.xlu1 %v2009_v38, %s2087_s3  ;;  %v2011_v27 = vpop.eup %2010 }
 0x942   :  { %v2013_v42 = vpop.eup %2012  ;;  %v735_v44 = vadd.f32 1.0, %v2011_v27 }
 0x943   :  { %v762_v45 = vadd.f32 1.0, %v2013_v42 }
 0x944   :  { %2014 = vrcp.f32 %v735_v44 }
 0x945   :  { %2016 = vrcp.f32 %v762_v45 }
 0x94e   :  { %v2015_v47 = vpop.eup %2014 }
 0x94f   :  { %v2017_v51 = vpop.eup %2016  ;;  %v739_v60 = vmul.f32 %v2015_v47, %v605_v7 }
 0x950   :  { %v766_v49 = vmul.f32 %v2017_v51, %v632_v9 }
 0x9b2   :  { %v742_v50 = vpop.permute.xlu0 %741 }
 0x9b3   :  { %v744_v54 = vmul.f32 %v2015_v47, %v742_v50  ;;  %v769_v57 = vpop.permute.xlu1 %768 }
 0x9b4   :  { %v771_v58 = vmul.f32 %v2017_v51, %v769_v57 }
 0x9b5   :  { %746 = vrot.lane.b32.xlu0 %v744_v54, %s2087_s3 }
 0x9b6   :  { %773 = vrot.lane.b32.xlu1 %v771_v58, %s2087_s3 }
 0xa27   :  { %v747_v61 = vpop.permute.xlu0 %746 }
 0xa28   :  { %v749_v62 = vadd.f32 %v747_v61, %v739_v60  ;;  %v774_v63 = vpop.permute.xlu1 %773 }
 0xa29   :  { %v776_v0 = vadd.f32 %v774_v63, %v766_v49 }
 0xa2a   :  { %2018 = vtanh.f32 %v749_v62 }
 0xa2b   :  { %2020 = vtanh.f32 %v776_v0 }
 0xa34   :  { %v2019_v53 = vpop.eup %2018 }
 0xa35   :  { %v2021_v1 = vpop.eup %2020  ;;  %752 = vrot.lane.b32.xlu0 %v2019_v53, %s2087_s3 }
 0xa36   :  { %779 = vrot.lane.b32.xlu1 %v2021_v1, %s2087_s3 }
 0xaa7   :  { %v753_v2 = vpop.permute.xlu0 %752 }
 0xaa8   :  { %v755_v4 = vmul.f32 %v2015_v47, %v753_v2  ;;  %v780_v5 = vpop.permute.xlu1 %779 }
 0xaa9   :  { %v2422_v6 = vmul.f32 %v2017_v51, %v780_v5 }
 0xaaa   :  { %784 = vrot.lane.b32.xlu0 %v755_v4, %s2088_s14 }
 0xaab   :  { %795 = vrot.lane.b32.xlu1 %v2422_v6, %s2089_s15 }
 0xb1c   :  { %v785_v7 = vpop.permute.xlu0 %784 }
 0xb1d   :  { %788 = vst.msk [vmem:[#allocation4 + $0x18] sm:$0xff] %vm54_vm0, %v785_v7  ;;  %v796_v8 = vpop.permute.xlu1 %795 }
 0xb1e   :  { %v798_v9 = vsel %vm54_vm0, %v785_v7, %v796_v8 }
 0xb1f   :  { %1697 = vmatmul.mubr.msk.f32.vlgmr.msra.gmra.mrb[10].mxu0 %vm224_vm1, %v798_v9 }
 0xb20   :  { %1897 = vmatpush1.bf16.msra.mxu0 %v2179_v21  ;;  %1154 = vmatprep.mubr.f32.mxu0 %v2086_v3 }
 0xb21   :  { %1899 = vmatprep.subr.bf16.mxu0 %v2182_v22 }
 0xb24   :  { %1901 = vmatpush1.bf16.msra.mxu0 %v2207_v29 }
 0xb25   :  { %1903 = vmatprep.subr.bf16.mxu0 %v2210_v30 }
 0xb28   :  { %1905 = vmatpush1.bf16.msra.mxu0 %v2233_v36 }
 0xb29   :  { %1907 = vmatprep.subr.bf16.mxu0 %v2236_v37 }
 0xb2c   :  { %1909 = vmatpush1.bf16.msra.mxu0 %v2252_v41 }
 0xbf2   :  { %v868_v14 = vpop.f32.mrb[10].mxu0 }
 0xbf3   :  { %v875_v16 = vadd.f32 %v868_v14, %v170_v10  ;;  %v870_v17 = vpop.f32.mrb[11].mxu0 }
 0xbf4   :  { %v902_v11 = vadd.f32 %v870_v17, %v166_v12 }
 0xbf5   :  { %2022 = vtanh.f32 %v875_v16  ;;  %v1698_v20 = vmul.f32 -1.442695, %v875_v16 }
 0xbf6   :  { %2024 = vtanh.f32 %v902_v11  ;;  %v1699_v23 = vmul.f32 -1.442695, %v902_v11 }
 0xbf7   :  { %2026 = vpow2.f32 %v1698_v20 }
 0xbf8   :  { %2028 = vpow2.f32 %v1699_v23 }
 0xbff   :  { %v2023_v13 = vpop.eup %2022 }
 0xc00   :  { %v2025_v19 = vpop.eup %2024  ;;  %885 = vrot.lane.b32.xlu0 %v2023_v13, %s2087_s3 }
 0xc01   :  { %912 = vrot.lane.b32.xlu1 %v2025_v19, %s2087_s3  ;;  %v2027_v43 = vpop.eup %2026 }
 0xc02   :  { %v2029_v25 = vpop.eup %2028  ;;  %v879_v31 = vadd.f32 1.0, %v2027_v43 }
 0xc03   :  { %v906_v28 = vadd.f32 1.0, %v2029_v25 }
 0xc04   :  { %2030 = vrcp.f32 %v879_v31 }
 0xc05   :  { %2032 = vrcp.f32 %v906_v28 }
 0xc0e   :  { %v2031_v32 = vpop.eup %2030 }
 0xc0f   :  { %v2033_v35 = vpop.eup %2032  ;;  %v883_v27 = vmul.f32 %v2031_v32, %v749_v62 }
 0xc10   :  { %v910_v44 = vmul.f32 %v2033_v35, %v776_v0  ;;  %v176_v0 = vadd.f32 %v2279_v48, %v2290_v55 }
 0xc72   :  { %v886_v34 = vpop.permute.xlu0 %885 }
 0xc73   :  { %v888_v38 = vmul.f32 %v2031_v32, %v886_v34  ;;  %v913_v39 = vpop.permute.xlu1 %912 }
 0xc74   :  { %v915_v15 = vmul.f32 %v2033_v35, %v913_v39 }
 0xc75   :  { %890 = vrot.lane.b32.xlu0 %v888_v38, %s2087_s3  ;;  %v154_v38 = vadd.f32 %v2332_v40, %v2295_v59 }
 0xc76   :  { %917 = vrot.lane.b32.xlu1 %v915_v15, %s2087_s3 }
 0xce7   :  { %v891_v42 = vpop.permute.xlu0 %890 }
 0xce8   :  { %v893_v45 = vadd.f32 %v891_v42, %v883_v27  ;;  %v918_v47 = vpop.permute.xlu1 %917 }
 0xce9   :  { %v920_v50 = vadd.f32 %v918_v47, %v910_v44 }
 0xcea   :  { %2034 = vtanh.f32 %v893_v45 }
 0xceb   :  { %2036 = vtanh.f32 %v920_v50 }
 0xcf4   :  { %v2035_v51 = vpop.eup %2034 }
 0xcf5   :  { %v2037_v54 = vpop.eup %2036  ;;  %896 = vrot.lane.b32.xlu0 %v2035_v51, %s2087_s3 }
 0xcf6   :  { %923 = vrot.lane.b32.xlu1 %v2037_v54, %s2087_s3 }
 0xd67   :  { %v897_v57 = vpop.permute.xlu0 %896 }
 0xd68   :  { %v899_v58 = vmul.f32 %v2031_v32, %v897_v57  ;;  %v924_v60 = vpop.permute.xlu1 %923 }
 0xd69   :  { %v2448_v61 = vmul.f32 %v2033_v35, %v924_v60  ;;  %v182_v35 = vadd.f32 %v2286_v52, %v2290_v55 }
 0xd6a   :  { %928 = vrot.lane.b32.xlu0 %v899_v58, %s2088_s14 }
 0xd6b   :  { %939 = vrot.lane.b32.xlu1 %v2448_v61, %s2089_s15 }
 0xddc   :  { %v929_v49 = vpop.permute.xlu0 %928 }
 0xddd   :  { %932 = vst.msk [vmem:[#allocation4 + $0x20] sm:$0xff] %vm54_vm0, %v929_v49  ;;  %v940_v62 = vpop.permute.xlu1 %939 }
 0xdde   :  { %v942_v63 = vsel %vm54_vm0, %v929_v49, %v940_v62 }
 0xddf   :  { %1700 = vmatmul.mubr.msk.f32.vlgmr.msra.gmra.mrb[14].mxu1 %vm224_vm1, %v942_v63 }
 0xde0   :  { %1913 = vmatpush1.bf16.msra.mxu1 %v2179_v21  ;;  %1298 = vmatprep.mubr.f32.mxu1 %v2086_v3  ;;  %v160_v21 = vadd.f32 %v2366_v26, %v2295_v59 }
 0xde1   :  { %1915 = vmatprep.subr.bf16.mxu1 %v2182_v22 }
 0xde4   :  { %1917 = vmatpush1.bf16.msra.mxu1 %v2207_v29 }
 0xde5   :  { %1919 = vmatprep.subr.bf16.mxu1 %v2210_v30 }
 0xde8   :  { %1921 = vmatpush1.bf16.msra.mxu1 %v2233_v36 }
 0xde9   :  { %1923 = vmatprep.subr.bf16.mxu1 %v2236_v37 }
 0xdec   :  { %1925 = vmatpush1.bf16.msra.mxu1 %v2252_v41 }
 0xeb2   :  { %v1012_v53 = vpop.f32.mrb[14].mxu1 }
 0xeb3   :  { %v1019_v3 = vadd.f32 %v1012_v53, %v176_v0  ;;  %v1014_v1 = vpop.f32.mrb[15].mxu1 }
 0xeb4   :  { %v1046_v22 = vadd.f32 %v1014_v1, %v160_v21 }
 0xeb5   :  { %2038 = vtanh.f32 %v1019_v3  ;;  %v1701_v36 = vmul.f32 -1.442695, %v1019_v3 }
 0xeb6   :  { %2040 = vtanh.f32 %v1046_v22  ;;  %v1702_v37 = vmul.f32 -1.442695, %v1046_v22 }
 0xeb7   :  { %2042 = vpow2.f32 %v1701_v36 }
 0xeb8   :  { %2044 = vpow2.f32 %v1702_v37 }
 0xebf   :  { %v2039_v29 = vpop.eup %2038 }
 0xec0   :  { %v2041_v30 = vpop.eup %2040  ;;  %1029 = vrot.lane.b32.xlu0 %v2039_v29, %s2087_s3 }
 0xec1   :  { %1056 = vrot.lane.b32.xlu1 %v2041_v30, %s2087_s3  ;;  %v2043_v41 = vpop.eup %2042 }
 0xec2   :  { %v2045_v48 = vpop.eup %2044  ;;  %v1023_v2 = vadd.f32 1.0, %v2043_v41 }
 0xec3   :  { %v1050_v26 = vadd.f32 1.0, %v2045_v48 }
 0xec4   :  { %2046 = vrcp.f32 %v1023_v2 }
 0xec5   :  { %2048 = vrcp.f32 %v1050_v26 }
 0xece   :  { %v2047_v4 = vpop.eup %2046 }
 0xecf   :  { %v2049_v7 = vpop.eup %2048  ;;  %v1027_v12 = vmul.f32 %v2047_v4, %v893_v45 }
 0xed0   :  { %v1054_v16 = vmul.f32 %v2049_v7, %v920_v50 }
 0xf32   :  { %v1030_v5 = vpop.permute.xlu0 %1029 }
 0xf33   :  { %v1032_v8 = vmul.f32 %v2047_v4, %v1030_v5  ;;  %v1057_v9 = vpop.permute.xlu1 %1056  ;;  %v188_v5 = vadd.f32 %v2292_v56, %v2290_v55 }
 0xf34   :  { %v1059_v10 = vmul.f32 %v2049_v7, %v1057_v9 }
 0xf35   :  { %1034 = vrot.lane.b32.xlu0 %v1032_v8, %s2087_s3 }
 0xf36   :  { %1061 = vrot.lane.b32.xlu1 %v1059_v10, %s2087_s3 }
 0xfa7   :  { %v1035_v14 = vpop.permute.xlu0 %1034 }
 0xfa8   :  { %v1037_v17 = vadd.f32 %v1035_v14, %v1027_v12  ;;  %v1062_v11 = vpop.permute.xlu1 %1061 }
 0xfa9   :  { %v1064_v13 = vadd.f32 %v1062_v11, %v1054_v16 }
 0xfaa   :  { %2050 = vtanh.f32 %v1037_v17 }
 0xfab   :  { %2052 = vtanh.f32 %v1064_v13 }
 0xfb4   :  { %v2051_v19 = vpop.eup %2050 }
 0xfb5   :  { %v2053_v20 = vpop.eup %2052  ;;  %1040 = vrot.lane.b32.xlu0 %v2051_v19, %s2087_s3 }
 0xfb6   :  { %1067 = vrot.lane.b32.xlu1 %v2053_v20, %s2087_s3 }
0x1027   :  { %v1041_v23 = vpop.permute.xlu0 %1040 }
0x1028   :  { %v1043_v43 = vmul.f32 %v2047_v4, %v1041_v23  ;;  %v1068_v25 = vpop.permute.xlu1 %1067 }
0x1029   :  { %v2474_v31 = vmul.f32 %v2049_v7, %v1068_v25  ;;  %v148_v7 = vadd.f32 %v2277_v46, %v2295_v59 }
0x102a   :  { %1072 = vrot.lane.b32.xlu0 %v1043_v43, %s2088_s14 }
0x102b   :  { %1083 = vrot.lane.b32.xlu1 %v2474_v31, %s2089_s15 }
0x109c   :  { %v1073_v28 = vpop.permute.xlu0 %1072 }
0x109d   :  { %1076 = vst.msk [vmem:[#allocation4 + $0x28] sm:$0xff] %vm54_vm0, %v1073_v28  ;;  %v1084_v32 = vpop.permute.xlu1 %1083 }
0x109e   :  { %v1086_v34 = vsel %vm54_vm0, %v1073_v28, %v1084_v32 }
0x109f   :  { %1703 = vmatmul.mubr.msk.f32.vlgmr.msra.gmra.mrb[12].mxu0 %vm224_vm1, %v1086_v34 }
0x1172   :  { %v1156_v39 = vpop.f32.mrb[12].mxu0 }
0x1173   :  { %v1163_v15 = vadd.f32 %v1156_v39, %v182_v35  ;;  %v1158_v27 = vpop.f32.mrb[13].mxu0 }
0x1174   :  { %v1190_v42 = vadd.f32 %v1158_v27, %v154_v38 }
0x1175   :  { %2054 = vtanh.f32 %v1163_v15  ;;  %v1704_v47 = vmul.f32 -1.442695, %v1163_v15 }
0x1176   :  { %2056 = vtanh.f32 %v1190_v42  ;;  %v1705_v50 = vmul.f32 -1.442695, %v1190_v42  ;;  %v1389_v42 = vld [vmem:[%s2602_s5] sm:$0xff] }
0x1177   :  { %2058 = vpow2.f32 %v1704_v47 }
0x1178   :  { %2060 = vpow2.f32 %v1705_v50 }
0x117f   :  { %v2055_v44 = vpop.eup %2054 }
0x1180   :  { %v2057_v45 = vpop.eup %2056  ;;  %1173 = vrot.lane.b32.xlu0 %v2055_v44, %s2087_s3  ;;  %v1390_v44 = vld [vmem:[%s2602_s5 + $0x8] sm:$0xff] }
0x1181   :  { %1200 = vrot.lane.b32.xlu1 %v2057_v45, %s2087_s3  ;;  %v2059_v52 = vpop.eup %2058  ;;  %v1926_v45 = vpack.c.bf16 %v1390_v44, %v1389_v42 }
0x1182   :  { %v2061_v51 = vpop.eup %2060  ;;  %v1167_v54 = vadd.f32 1.0, %v2059_v52  ;;  %v1377_v52 = vld [vmem:[%s2603_s4] sm:$0xff] }
0x1183   :  { %v1194_v40 = vadd.f32 1.0, %v2061_v51  ;;  %1927 = vmatprep.subr.bf16.mxu0 %v1926_v45  ;;  %v1378_v51 = vld [vmem:[%s2603_s4 + $0x8] sm:$0xff] }
0x1184   :  { %2062 = vrcp.f32 %v1167_v54  ;;  %1929 = vmatpush3.bf16.msra.mxu0 %v1926_v45 }
0x1185   :  { %2064 = vrcp.f32 %v1194_v40  ;;  %v1934_v40 = vpack.c.bf16 %v1378_v51, %v1377_v52 }
0x118e   :  { %v2063_v57 = vpop.eup %2062 }
0x118f   :  { %v2065_v60 = vpop.eup %2064  ;;  %v1171_v0 = vmul.f32 %v2063_v57, %v1037_v17 }
0x1190   :  { %v1198_v53 = vmul.f32 %v2065_v60, %v1064_v13 }
0x11f2   :  { %v1174_v58 = vpop.permute.xlu0 %1173 }
0x11f3   :  { %v1176_v49 = vmul.f32 %v2063_v57, %v1174_v58  ;;  %v1201_v62 = vpop.permute.xlu1 %1200 }
0x11f4   :  { %v1203_v63 = vmul.f32 %v2065_v60, %v1201_v62 }
0x11f5   :  { %1178 = vrot.lane.b32.xlu0 %v1176_v49, %s2087_s3 }
0x11f6   :  { %1205 = vrot.lane.b32.xlu1 %v1203_v63, %s2087_s3 }
0x1267   :  { %v1179_v21 = vpop.permute.xlu0 %1178 }
0x1268   :  { %v1181_v3 = vadd.f32 %v1179_v21, %v1171_v0  ;;  %v1206_v1 = vpop.permute.xlu1 %1205  ;;  %v1380_v0 = vld [vmem:[%s2603_s4 + $0x18] sm:$0xff] }
0x1269   :  { %v1208_v22 = vadd.f32 %v1206_v1, %v1198_v53 }
0x126a   :  { %2066 = vtanh.f32 %v1181_v3 }
0x126b   :  { %2068 = vtanh.f32 %v1208_v22 }
0x1274   :  { %v2067_v29 = vpop.eup %2066 }
0x1275   :  { %v2069_v30 = vpop.eup %2068  ;;  %1184 = vrot.lane.b32.xlu0 %v2067_v29, %s2087_s3 }
0x1276   :  { %1211 = vrot.lane.b32.xlu1 %v2069_v30, %s2087_s3 }
0x12e7   :  { %v1185_v36 = vpop.permute.xlu0 %1184 }
0x12e8   :  { %v1187_v37 = vmul.f32 %v2063_v57, %v1185_v36  ;;  %v1212_v41 = vpop.permute.xlu1 %1211 }
0x12e9   :  { %v1214_v48 = vmul.f32 %v2065_v60, %v1212_v41 }
0x12ea   :  { %1216 = vrot.lane.b32.xlu0 %v1187_v37, %s2088_s14 }
0x12eb   :  { %1227 = vrot.lane.b32.xlu1 %v1214_v48, %s2089_s15 }
0x135c   :  { %v1217_v2 = vpop.permute.xlu0 %1216 }
0x135d   :  { %1220 = vst.msk [vmem:[#allocation4 + $0x30] sm:$0xff] %vm54_vm0, %v1217_v2  ;;  %v1228_v26 = vpop.permute.xlu1 %1227 }
0x135e   :  { %v1230_v4 = vsel %vm54_vm0, %v1217_v2, %v1228_v26  ;;  %v1369_v2 = vld [vmem:[#allocation4] sm:$0xff]  ;;  %v1370_v26 = vld [vmem:[#allocation4 + $0x8] sm:$0xff] }
0x135f   :  { %1706 = vmatmul.mubr.msk.f32.vlgmr.msra.gmra.mrb[16].mxu1 %vm224_vm1, %v1230_v4  ;;  %v1371_v4 = vld [vmem:[#allocation4 + $0x10] sm:$0xff] }
0x1432   :  { %v1300_v8 = vpop.f32.mrb[16].mxu1 }
0x1433   :  { %v1307_v9 = vadd.f32 %v1300_v8, %v188_v5  ;;  %v1302_v10 = vpop.f32.mrb[17].mxu1  ;;  %v1372_v5 = vld [vmem:[#allocation4 + $0x18] sm:$0xff]  ;;  %v1374_v8 = vld [vmem:[#allocation4 + $0x28] sm:$0xff] }
0x1434   :  { %v1333_v12 = vadd.f32 %v1302_v10, %v148_v7  ;;  %v1373_v7 = vld [vmem:[#allocation4 + $0x20] sm:$0xff] }
0x1435   :  { %2070 = vtanh.f32 %v1307_v9  ;;  %v1707_v17 = vmul.f32 -1.442695, %v1307_v9  ;;  %v1375_v9 = vld [vmem:[#allocation4 + $0x30] sm:$0xff] }
0x1436   :  { %2072 = vtanh.f32 %v1333_v12  ;;  %v1708_v11 = vmul.f32 -1.442695, %v1333_v12  ;;  %v1725_v12 = vld [vmem:[%s2604_s6] ss:$0 sm:$0xff] }
0x1437   :  { %2074 = vpow2.f32 %v1707_v17 }
0x1438   :  { %2076 = vpow2.f32 %v1708_v11 }
0x143f   :  { %v2071_v14 = vpop.eup %2070 }
0x1440   :  { %v2073_v16 = vpop.eup %2072  ;;  %1317 = vrot.lane.b32.xlu1 %v2071_v14, %s2087_s3 }
0x1441   :  { %1343 = vrot.lane.b32.xlu0 %v2073_v16, %s2087_s3  ;;  %v2075_v55 = vpop.eup %2074 }
0x1442   :  { %v2077_v56 = vpop.eup %2076  ;;  %v1311_v13 = vadd.f32 1.0, %v2075_v55 }
0x1443   :  { %v1337_v46 = vadd.f32 1.0, %v2077_v56 }
0x1444   :  { %2078 = vrcp.f32 %v1311_v13 }
0x1445   :  { %2080 = vrcp.f32 %v1337_v46 }
0x144e   :  { %v2079_v59 = vpop.eup %2078 }
0x144f   :  { %v2081_v20 = vpop.eup %2080  ;;  %v1315_v28 = vmul.f32 %v2079_v59, %v1181_v3 }
0x1450   :  { %v1341_v34 = vmul.f32 %v2081_v20, %v1208_v22 }
0x14b2   :  { %v1318_v19 = vpop.permute.xlu1 %1317 }
0x14b3   :  { %v1320_v23 = vmul.f32 %v2079_v59, %v1318_v19  ;;  %v1344_v43 = vpop.permute.xlu0 %1343 }
0x14b4   :  { %v1346_v25 = vmul.f32 %v2081_v20, %v1344_v43 }
0x14b5   :  { %1322 = vrot.lane.b32.xlu1 %v1320_v23, %s2087_s3 }
0x14b6   :  { %1348 = vrot.lane.b32.xlu0 %v1346_v25, %s2087_s3 }
0x1527   :  { %v1323_v32 = vpop.permute.xlu1 %1322 }
0x1528   :  { %v1325_v35 = vadd.f32 %v1323_v32, %v1315_v28  ;;  %v1349_v38 = vpop.permute.xlu0 %1348 }
0x1529   :  { %v1351_v39 = vadd.f32 %v1349_v38, %v1341_v34 }
0x152a   :  { %2082 = vtanh.f32 %v1325_v35 }
0x152b   :  { %2084 = vtanh.f32 %v1351_v39 }
0x1534   :  { %v2083_v15 = vpop.eup %2082 }
0x1535   :  { %v2085_v27 = vpop.eup %2084  ;;  %1328 = vrot.lane.b32.xlu1 %v2083_v15, %s2087_s3 }
0x1536   :  { %1354 = vrot.lane.b32.xlu0 %v2085_v27, %s2087_s3 }
0x1539   :  { %1222 = vrot.lane.b32.xlu1 %v1214_v48, %s2088_s14 }
0x153d   :  { %934 = vrot.lane.b32.xlu1 %v2448_v61, %s2088_s14  ;;  %v1391_v61 = vld [vmem:[%s2602_s5 + $0x10] sm:$0xff] }
0x1541   :  { %646 = vrot.lane.b32.xlu1 %v2395_v18, %s2088_s14  ;;  %v1392_v18 = vld [vmem:[%s2602_s5 + $0x18] sm:$0xff] }
0x1545   :  { %358 = vrot.lane.b32.xlu1 %v2316_v33, %s2088_s14  ;;  %v1930_v33 = vpack.c.bf16 %v1392_v18, %v1391_v61 }
0x1547   :  { %1931 = vmatprep.subr.bf16.mxu0 %v1930_v33 }
0x1548   :  { %1933 = vmatpush3.bf16.msra.mxu0 %v1930_v33 }
0x1549   :  { %1935 = vmatprep.subr.bf16.mxu0 %v1934_v40 }
0x15a7   :  { %v1329_v47 = vpop.permute.xlu1 %1328 }
0x15a8   :  { %v1355_v50 = vpop.permute.xlu0 %1354  ;;  %v1331_v62 = vmul.f32 %v2079_v59, %v1329_v47 }
0x15a9   :  { %v1357_v54 = vmul.f32 %v2081_v20, %v1355_v50 }
0x15ab   :  { %v1223_v57 = vpop.permute.xlu1 %1222  ;;  %1365 = vrot.lane.b32.xlu0 %v1357_v54, %s2088_s14 }
0x15ac   :  { %1226 = vst.msk [vmem:[#allocation5 + $0x8] sm:$0xff] %vm54_vm0, %v1223_v57 }
0x15af   :  { %v935_v58 = vpop.permute.xlu1 %934  ;;  %1078 = vrot.lane.b32.xlu0 %v2474_v31, %s2088_s14 }
0x15b0   :  { %938 = vst.msk [vmem:[#allocation5 + $0x18] sm:$0xff] %vm54_vm0, %v935_v58 }
0x15b3   :  { %v647_v60 = vpop.permute.xlu1 %646  ;;  %790 = vrot.lane.b32.xlu0 %v2422_v6, %s2088_s14  ;;  %v1379_v6 = vld [vmem:[%s2603_s4 + $0x10] sm:$0xff]  ;;  %v1382_v3 = vld [vmem:[#allocation5 + $0x8] sm:$0xff] }
0x15b4   :  { %650 = vst.msk [vmem:[#allocation5 + $0x28] sm:$0xff] %vm54_vm0, %v647_v60  ;;  %v1938_v53 = vpack.c.bf16 %v1380_v0, %v1379_v6 }
0x15b7   :  { %v359_v49 = vpop.permute.xlu1 %358  ;;  %502 = vrot.lane.b32.xlu0 %v2361_v24, %s2088_s14  ;;  %v1384_v29 = vld [vmem:[#allocation5 + $0x18] sm:$0xff] }
0x15b8   :  { %362 = vst.msk [vmem:[#allocation5 + $0x38] sm:$0xff] %vm54_vm0, %v359_v49 }
0x15bb   :  { %1359 = vrot.lane.b32.xlu0 %v1331_v62, %s2088_s14  ;;  %v1386_v37 = vld [vmem:[#allocation5 + $0x28] sm:$0xff] }
0x15bf   :  { %v1388_v48 = vld [vmem:[#allocation5 + $0x38] sm:$0xff] }
0x161d   :  { %v1366_v63 = vpop.permute.xlu0 %1365 }
0x161e   :  { %1368 = vst.msk [vmem:[#allocation5] sm:$0xff] %vm54_vm0, %v1366_v63 }
0x1621   :  { %v1079_v31 = vpop.permute.xlu0 %1078 }
0x1622   :  { %1082 = vst.msk [vmem:[#allocation5 + $0x10] sm:$0xff] %vm54_vm0, %v1079_v31 }
0x1625   :  { %v791_v24 = vpop.permute.xlu0 %790  ;;  %v1381_v21 = vld [vmem:[#allocation5] sm:$0xff] }
0x1626   :  { %794 = vst.msk [vmem:[#allocation5 + $0x20] sm:$0xff] %vm54_vm0, %v791_v24  ;;  %1758 = vmatprep.mubr.msk.f32.mxu0 %vm54_vm0, %v1381_v21 }
0x1627   :  { %1759 = vmatmul.mubr.msk.f32.vlgmr.msra.gmra.mrb[14].mxu0 %vm54_vm0, %v1382_v3 }
0x1628   :  { %1937 = vmatpush3.bf16.msra.mxu0 %v1934_v40 }
0x1629   :  { %v503_v1 = vpop.permute.xlu0 %502  ;;  %v1383_v22 = vld [vmem:[#allocation5 + $0x10] sm:$0xff]  ;;  %1939 = vmatprep.subr.bf16.mxu0 %v1938_v53 }
0x162a   :  { %506 = vst.msk [vmem:[#allocation5 + $0x30] sm:$0xff] %vm54_vm0, %v503_v1  ;;  %1761 = vmatprep.mubr.msk.f32.mxu0 %vm54_vm0, %v1383_v22 }
0x162b   :  { %1762 = vmatmul.mubr.msk.f32.gmra.mrb[16].mxu0 %vm54_vm0, %v1384_v29 }
0x162c   :  { %1941 = vmatpush3.bf16.msra.mxu0 %v1938_v53 }
0x162d   :  { %v1360_v30 = vpop.permute.xlu0 %1359  ;;  %v1385_v36 = vld [vmem:[#allocation5 + $0x20] sm:$0xff] }
0x162e   :  { %1363 = vst.msk [vmem:[#allocation4 + $0x38] sm:$0xff] %vm54_vm0, %v1360_v30  ;;  %1764 = vmatprep.mubr.msk.f32.mxu0 %vm54_vm0, %v1385_v36 }
0x162f   :  { %1765 = vmatmul.mubr.msk.f32.gmra.mrb[18].mxu0 %vm54_vm0, %v1386_v37 }
0x1631   :  { %v1387_v41 = vld [vmem:[#allocation5 + $0x30] sm:$0xff] }
0x1632   :  { %1767 = vmatprep.mubr.msk.f32.mxu0 %vm54_vm0, %v1387_v41 }
0x1633   :  { %1768 = vmatmul.mubr.msk.f32.gmra.mrb[20].mxu0 %vm54_vm0, %v1388_v48 }
0x1634   :  { %1778 = vmatprep.mubr.msk.f32.mxu0 %vm54_vm0, %v1369_v2 }
0x1635   :  { %v1376_v10 = vld [vmem:[#allocation4 + $0x38] sm:$0xff] }
0x1637   :  { %1779 = vmatmul.mubr.msk.f32.vlgmr.msra.gmra.mrb[14].mxu0 %vm54_vm0, %v1370_v26 }
0x1638   :  { %1781 = vmatprep.mubr.msk.f32.mxu0 %vm54_vm0, %v1371_v4 }
0x163b   :  { %1782 = vmatmul.mubr.msk.f32.gmra.mrb[16].mxu0 %vm54_vm0, %v1372_v5 }
0x163c   :  { %1784 = vmatprep.mubr.msk.f32.mxu0 %vm54_vm0, %v1373_v7 }
0x163f   :  { %1785 = vmatmul.mubr.msk.f32.gmra.mrb[18].mxu0 %vm54_vm0, %v1374_v8 }
0x1640   :  { %1787 = vmatprep.mubr.msk.f32.mxu0 %vm54_vm0, %v1375_v9 }
0x1643   :  { %1788 = vmatmul.mubr.msk.f32.gmra.mrb[20].mxu0 %vm54_vm0, %v1376_v10 }
0x170a   :  { %v1780_v14 = vpop.f32.mrb[14].mxu0 }
0x170b   :  { %v1659_v16 = vadd.f32 %v1780_v14, %v1725_v12  ;;  %v1612_v17 = vpop.f32.mrb[15].mxu0 }
0x170c   :  { %v1658_v11 = vadd.f32 %v1725_v12, %v1612_v17 }
0x170d   :  { %1667 = vst [vmem:[%s2605_s7 + $0x8] sm:$0xff] %v1659_v16 }
0x170e   :  { %1666 = vst [vmem:[%s2605_s7] sm:$0xff] %v1658_v11  ;;  %v1783_v55 = vpop.f32.mrb[16].mxu0 }
0x170f   :  { %v1661_v56 = vadd.f32 %v1783_v55, %v1725_v12  ;;  %v1622_v13 = vpop.f32.mrb[17].mxu0 }
0x1710   :  { %v1660_v46 = vadd.f32 %v1725_v12, %v1622_v13 }
0x1711   :  { %1669 = vst [vmem:[%s2605_s7 + $0x18] sm:$0xff] %v1661_v56 }
0x1712   :  { %1668 = vst [vmem:[%s2605_s7 + $0x10] sm:$0xff] %v1660_v46  ;;  %v1786_v59 = vpop.f32.mrb[18].mxu0 }
0x1713   :  { %v1663_v19 = vadd.f32 %v1786_v59, %v1725_v12  ;;  %v1632_v20 = vpop.f32.mrb[19].mxu0 }
0x1714   :  { %v1662_v23 = vadd.f32 %v1725_v12, %v1632_v20 }
0x1715   :  { %1671 = vst [vmem:[%s2605_s7 + $0x28] sm:$0xff] %v1663_v19 }
0x1716   :  { %1670 = vst [vmem:[%s2605_s7 + $0x20] sm:$0xff] %v1662_v23  ;;  %v1789_v43 = vpop.f32.mrb[20].mxu0 }
0x1717   :  { %v1665_v25 = vadd.f32 %v1789_v43, %v1725_v12  ;;  %v1642_v28 = vpop.f32.mrb[21].mxu0 }
0x1718   :  { %v1664_v32 = vadd.f32 %v1725_v12, %v1642_v28 }
0x1719   :  { %1673 = vst [vmem:[%s2605_s7 + $0x38] sm:$0xff] %v1665_v25 }
0x171a   :  { %1672 = vst [vmem:[%s2605_s7 + $0x30] sm:$0xff] %v1664_v32 }

</bundles_post_ra>
